<compile_context>
chip_gen: v5e
topology: v5e:2x2
jax: 0.10.0
libtpu: 0.0.40
codegen_flags: <defaults>
</compile_context>

<pallas_src>
import functools

import jax
import jax.numpy as jnp
from jax import lax
from jax.experimental import pallas as pl
from jax.experimental.pallas import tpu as pltpu


def _local_attention_kernel(x_ref, w0_ref, ktb_ref, w1_ref, o_ref, *, W, L):
    # x_ref  : (C+1, L)   bf16  raw input chunk (Bt images) + constant-ones row
    # w0_ref : (C+1, C+1) bf16  bn1+conv0 folded; bias in last column,
    #                           ones-passthrough in last row
    # ktb_ref: (9, C+1, L) f32  depthwise taps, pre-broadcast over lanes and
    #                           pre-masked (borders + image seams)
    # w1_ref : (Cout, C+1) bf16 bn2+conv1 folded; bias in last column
    # o_ref  : (Cout, L)   f32
    #
    # bn1 + pointwise_conv_0 (+ bias): one bf16 MXU matmul, f32 accumulation.
    y = jnp.dot(w0_ref[...], x_ref[...], preferred_element_type=jnp.float32)

    # Depthwise 3x3, padding=1: neighbor (h+dy, w+dx) lives at lane offset
    # d = dy*W + dx.  Per tap: lane-roll (XLU slot) + mul + add (VPU).  Border
    # and seam masking is baked into ktb, so no per-tap mask work is emitted.
    acc = ktb_ref[4] * y                                   # center tap
    tap = 0
    for dy in (-1, 0, 1):
        for dx in (-1, 0, 1):
            if dy == 0 and dx == 0:
                tap += 1
                continue
            d = dy * W + dx
            shifted = pltpu.roll(y, shift=(-d) % L, axis=1)  # shifted[n] = y[n+d]
            acc = acc + ktb_ref[tap] * shifted
            tap += 1

    # bn2 + pointwise_conv_1 (+ bias): second bf16 MXU matmul.
    out = jnp.dot(w1_ref[...], acc.astype(jnp.bfloat16),
                  preferred_element_type=jnp.float32)
    o_ref[...] = out.astype(o_ref.dtype)


def local_attention(x, params, *, eps=1e-5):
    """LocalAttention forward (eval-mode BatchNorm) as a Pallas TPU kernel.

    x: (B, C, H, W) float32 NCHW.
    params:
      'w0'  (C, C)     pointwise_conv_0 weight (Conv2d(C,C,1,bias=False) squeezed)
      'dw'  (C, 3, 3)  depthwise_conv weight  (Conv2d(C,C,3,groups=C,bias=False))
      'w1'  (Cout, C)  pointwise_conv_1 weight
      'bn1' / 'bn2':   (gamma, beta, running_mean, running_var)
    """
    B, C, H, W = x.shape
    w0, dw, w1 = params['w0'], params['dw'], params['w1']
    g1, be1, m1, v1 = params['bn1']
    g2, be2, m2, v2 = params['bn2']
    Cout = w1.shape[0]
    N = H * W
    C1 = C + 1                                 # extra constant-ones channel

    # ---- Images per grid step: collapse the whole batch into lanes when it
    # fits (demo -> grid=(1,), 512 lanes); for big batches pick the largest
    # divisor whose double-buffered blocks stay well under scoped VMEM on every
    # generation (v7x: 64 MiB physical / 32 MiB scoped), keeping lanes %128==0.
    def step_bytes(bt):
        l = bt * N
        return C1 * l * 2 + 9 * C1 * l * 4 + Cout * l * 4

    Bt = 1
    for cand in range(B, 0, -1):
        if B % cand:
            continue
        if 2 * step_bytes(cand) > 24 * 1024 * 1024:
            continue
        if cand != B and (cand * N) % 128:
            continue
        Bt = cand
        break
    L = Bt * N
    steps = B // Bt

    # ---- Fold eval-mode BN into the adjacent 1x1 convs (exact algebra):
    #   conv(bn(x)) = (W * s) @ x + W @ t,  s = g/sqrt(v+eps),  t = b - m*s
    # then fold the biases into the matmuls via a ones row / bias column.
    s1 = g1 / jnp.sqrt(v1 + eps)
    t1 = be1 - m1 * s1
    s2 = g2 / jnp.sqrt(v2 + eps)
    t2 = be2 - m2 * s2
    w0f = w0 * s1[None, :]
    b0f = w0 @ t1                                          # (C,)
    w1f = w1 * s2[None, :]
    b1f = w1 @ t2                                          # (Cout,)

    w0_aug = jnp.zeros((C1, C1), jnp.float32)
    w0_aug = w0_aug.at[:C, :C].set(w0f).at[:C, C].set(b0f).at[C, C].set(1.0)
    w1_aug = jnp.concatenate([w1f, b1f[:, None]], axis=1)  # (Cout, C1)

    # ---- Depthwise taps: pre-broadcast over the lane axis and pre-masked so
    # the padding=1 borders AND the seams between images collapsed into lanes
    # are zeroed.  The ones-channel keeps only its center tap (passthrough).
    pos = jnp.arange(N, dtype=jnp.int32)
    row, col = pos // W, pos % W
    masks = []
    for dy in (-1, 0, 1):
        for dx in (-1, 0, 1):
            m = jnp.ones((N,), dtype=bool)
            if dy < 0:
                m = m & (row >= -dy)
            if dy > 0:
                m = m & (row < H - dy)
            if dx < 0:
                m = m & (col >= -dx)
            if dx > 0:
                m = m & (col < W - dx)
            masks.append(m)
    masks = jnp.tile(jnp.stack(masks), (1, Bt)).astype(jnp.float32)   # (9, L)

    dw_flat = dw.reshape(C, 9)                             # tap = (dy+1)*3+(dx+1)
    ones_ch = jnp.zeros((1, 9), jnp.float32).at[0, 4].set(1.0)
    taps = jnp.concatenate([dw_flat, ones_ch], axis=0)     # (C1, 9)
    ktb = taps.T[:, :, None] * masks[:, None, :]           # (9, C1, L) f32

    # ---- Activations: channels -> sublanes, batch*H*W -> lanes (lane-dense),
    # ones row appended; bf16 halves the activation/weight DMA bytes.
    x_flat = jnp.transpose(x, (1, 0, 2, 3)).reshape(C, B * N)
    x_aug = jnp.concatenate([x_flat, jnp.ones((1, B * N), x_flat.dtype)], axis=0)
    x_bf = x_aug.astype(jnp.bfloat16)
    w0_bf = w0_aug.astype(jnp.bfloat16)
    w1_bf = w1_aug.astype(jnp.bfloat16)

    flops = 2 * B * N * C1 * (C1 + Cout) + 2 * 9 * B * N * C1
    bytes_accessed = (x_bf.size * 2 + ktb.size * 4 + w0_bf.size * 2
                      + w1_bf.size * 2 + Cout * B * N * 4)

    kernel = functools.partial(_local_attention_kernel, W=W, L=L)
    out = pl.pallas_call(
        kernel,
        out_shape=jax.ShapeDtypeStruct((Cout, B * N), jnp.float32),
        grid_spec=pltpu.PrefetchScalarGridSpec(
            num_scalar_prefetch=0,
            grid=(steps,),
            in_specs=[
                pl.BlockSpec((C1, L), lambda i: (0, i)),        # x chunk
                pl.BlockSpec((C1, C1), lambda i: (0, 0)),       # w0 (folded)
                pl.BlockSpec((9, C1, L), lambda i: (0, 0, 0)),  # masked taps
                pl.BlockSpec((Cout, C1), lambda i: (0, 0)),     # w1 (folded)
            ],
            out_specs=pl.BlockSpec((Cout, L), lambda i: (0, i)),
        ),
        compiler_params=pltpu.CompilerParams(
            dimension_semantics=("parallel",)),
        cost_estimate=pl.CostEstimate(
            flops=flops, transcendentals=0, bytes_accessed=bytes_accessed),
    )(x_bf, w0_bf, ktb, w1_bf)

    return out.reshape(Cout, B, H, W).transpose(1, 0, 2, 3)


def _reference(x, params, *, eps=1e-5):
    """Pure-JAX replica of the PyTorch forward (eval-mode BN) for validation."""
    w0, dw, w1 = params['w0'], params['dw'], params['w1']
    g1, be1, m1, v1 = params['bn1']
    g2, be2, m2, v2 = params['bn2']
    C = w0.shape[1]

    def bn(z, g, b, m, v):
        inv = g / jnp.sqrt(v + eps)
        return z * inv[None, :, None, None] + (b - m * inv)[None, :, None, None]

    y = bn(x, g1, be1, m1, v1)
    y = jnp.einsum('oc,bchw->bohw', w0, y)
    y = lax.conv_general_dilated(
        y, dw[:, None, :, :], window_strides=(1, 1),
        padding=((1, 1), (1, 1)),
        dimension_numbers=('NCHW', 'OIHW', 'NCHW'),
        feature_group_count=C)
    y = bn(y, g2, be2, m2, v2)
    y = jnp.einsum('oc,bchw->bohw', w1, y)
    return y


if __name__ == "__main__":
    B, C, Cout, H, W = 2, 32, 32, 16, 16   # in_dim=out_dim=32, B*H*W = 512 lanes

    key = jax.random.PRNGKey(0)
    ks = jax.random.split(key, 10)
    x = jax.random.normal(ks[0], (B, C, H, W), dtype=jnp.float32)
    params = {
        'w0': jax.random.normal(ks[1], (C, C), jnp.float32) / jnp.sqrt(C),
        'dw': jax.random.normal(ks[2], (C, 3, 3), jnp.float32) / 3.0,
        'w1': jax.random.normal(ks[3], (Cout, C), jnp.float32) / jnp.sqrt(C),
        'bn1': (1.0 + 0.1 * jax.random.normal(ks[4], (C,), jnp.float32),
                0.1 * jax.random.normal(ks[5], (C,), jnp.float32),
                0.1 * jax.random.normal(ks[6], (C,), jnp.float32),
                0.5 + jax.random.uniform(ks[7], (C,), jnp.float32)),
        'bn2': (1.0 + 0.1 * jax.random.normal(ks[8], (C,), jnp.float32),
                0.1 * jax.random.normal(ks[9], (C,), jnp.float32),
                jnp.zeros((C,), jnp.float32),
                jnp.ones((C,), jnp.float32)),
    }

    y = local_attention(x, params)
    y = jax.block_until_ready(y)

    y_ref = _reference(x, params)
    assert y.shape == (B, Cout, H, W), y.shape
    max_err = float(jnp.max(jnp.abs(y - y_ref)))
    # bf16 matmul operands with f32 accumulation: ~2e-2 is the meaningful bound.
    assert jnp.allclose(y, y_ref, atol=2e-2, rtol=2e-2), max_err

    print("KERNEL_OK")
</pallas_src>

<mosaic_0001>
module attributes {stable_mosaic.version = 11 : i64} {
  func.func @_local_attention_kernel(%arg0: i32, %arg1: memref<33x512xbf16, #tpu.memory_space<vmem>>, %arg2: memref<33x33xbf16, #tpu.memory_space<vmem>>, %arg3: memref<9x33x512xf32, #tpu.memory_space<vmem>>, %arg4: memref<32x33xbf16, #tpu.memory_space<vmem>>, %arg5: memref<32x512xf32, #tpu.memory_space<vmem>>) attributes {dimension_semantics = [#tpu.dimension_semantics<parallel>], iteration_bounds = array<i64: 1>, scalar_prefetch = 0 : i64, scratch_operands = 0 : i64, tpu.core_type = #tpu.core_type<tc>, window_params = [{transform_indices = @transform_0, window_bounds = array<i64: 33, 512>}, {pipeline_mode = #tpu.pipeline_mode<synchronous>, transform_indices = @transform_1, window_bounds = array<i64: 33, 33>}, {pipeline_mode = #tpu.pipeline_mode<synchronous>, transform_indices = @transform_2, window_bounds = array<i64: 9, 33, 512>}, {pipeline_mode = #tpu.pipeline_mode<synchronous>, transform_indices = @transform_3, window_bounds = array<i64: 32, 33>}, {transform_indices = @transform_4, window_bounds = array<i64: 32, 512>}]} {
    %c0 = arith.constant 0 : index
    %c0_0 = arith.constant 0 : index
    %0 = vector.load %arg2[%c0, %c0_0] : memref<33x33xbf16, #tpu.memory_space<vmem>>, vector<33x33xbf16>
    %c0_1 = arith.constant 0 : index
    %c0_2 = arith.constant 0 : index
    %1 = vector.load %arg1[%c0_1, %c0_2] : memref<33x512xbf16, #tpu.memory_space<vmem>>, vector<33x512xbf16>
    %cst = arith.constant dense<0.000000e+00> : vector<33x512xf32>
    %2 = tpu.matmul %0, %1, %cst {dimension_numbers = #tpu.dot_dimension_numbers<[1], [0], [0], [1], [0, 0, 1, 1], [], []>} : vector<33x33xbf16>, vector<33x512xbf16>, vector<33x512xf32> -> vector<33x512xf32>
    %c4 = arith.constant 4 : index
    %c0_3 = arith.constant 0 : index
    %c0_4 = arith.constant 0 : index
    %3 = vector.load %arg3[%c4, %c0_3, %c0_4] : memref<9x33x512xf32, #tpu.memory_space<vmem>>, vector<1x33x512xf32>
    %4 = vector.shape_cast %3 : vector<1x33x512xf32> to vector<33x512xf32>
    %5 = arith.mulf %4, %2 : vector<33x512xf32>
    %c17_i32 = arith.constant 17 : i32
    %6 = tpu.dynamic_rotate %2 by %c17_i32 dim 1 : vector<33x512xf32>, i32 -> vector<33x512xf32>
    %c0_5 = arith.constant 0 : index
    %c0_6 = arith.constant 0 : index
    %c0_7 = arith.constant 0 : index
    %7 = vector.load %arg3[%c0_5, %c0_6, %c0_7] : memref<9x33x512xf32, #tpu.memory_space<vmem>>, vector<1x33x512xf32>
    %8 = vector.shape_cast %7 : vector<1x33x512xf32> to vector<33x512xf32>
    %9 = arith.mulf %8, %6 : vector<33x512xf32>
    %10 = arith.addf %5, %9 : vector<33x512xf32>
    %c16_i32 = arith.constant 16 : i32
    %11 = tpu.dynamic_rotate %2 by %c16_i32 dim 1 : vector<33x512xf32>, i32 -> vector<33x512xf32>
    %c1 = arith.constant 1 : index
    %c0_8 = arith.constant 0 : index
    %c0_9 = arith.constant 0 : index
    %12 = vector.load %arg3[%c1, %c0_8, %c0_9] : memref<9x33x512xf32, #tpu.memory_space<vmem>>, vector<1x33x512xf32>
    %13 = vector.shape_cast %12 : vector<1x33x512xf32> to vector<33x512xf32>
    %14 = arith.mulf %13, %11 : vector<33x512xf32>
    %15 = arith.addf %10, %14 : vector<33x512xf32>
    %c15_i32 = arith.constant 15 : i32
    %16 = tpu.dynamic_rotate %2 by %c15_i32 dim 1 : vector<33x512xf32>, i32 -> vector<33x512xf32>
    %c2 = arith.constant 2 : index
    %c0_10 = arith.constant 0 : index
    %c0_11 = arith.constant 0 : index
    %17 = vector.load %arg3[%c2, %c0_10, %c0_11] : memref<9x33x512xf32, #tpu.memory_space<vmem>>, vector<1x33x512xf32>
    %18 = vector.shape_cast %17 : vector<1x33x512xf32> to vector<33x512xf32>
    %19 = arith.mulf %18, %16 : vector<33x512xf32>
    %20 = arith.addf %15, %19 : vector<33x512xf32>
    %c1_i32 = arith.constant 1 : i32
    %21 = tpu.dynamic_rotate %2 by %c1_i32 dim 1 : vector<33x512xf32>, i32 -> vector<33x512xf32>
    %c3 = arith.constant 3 : index
    %c0_12 = arith.constant 0 : index
    %c0_13 = arith.constant 0 : index
    %22 = vector.load %arg3[%c3, %c0_12, %c0_13] : memref<9x33x512xf32, #tpu.memory_space<vmem>>, vector<1x33x512xf32>
    %23 = vector.shape_cast %22 : vector<1x33x512xf32> to vector<33x512xf32>
    %24 = arith.mulf %23, %21 : vector<33x512xf32>
    %25 = arith.addf %20, %24 : vector<33x512xf32>
    %c511_i32 = arith.constant 511 : i32
    %26 = tpu.dynamic_rotate %2 by %c511_i32 dim 1 : vector<33x512xf32>, i32 -> vector<33x512xf32>
    %c5 = arith.constant 5 : index
    %c0_14 = arith.constant 0 : index
    %c0_15 = arith.constant 0 : index
    %27 = vector.load %arg3[%c5, %c0_14, %c0_15] : memref<9x33x512xf32, #tpu.memory_space<vmem>>, vector<1x33x512xf32>
    %28 = vector.shape_cast %27 : vector<1x33x512xf32> to vector<33x512xf32>
    %29 = arith.mulf %28, %26 : vector<33x512xf32>
    %30 = arith.addf %25, %29 : vector<33x512xf32>
    %c497_i32 = arith.constant 497 : i32
    %31 = tpu.dynamic_rotate %2 by %c497_i32 dim 1 : vector<33x512xf32>, i32 -> vector<33x512xf32>
    %c6 = arith.constant 6 : index
    %c0_16 = arith.constant 0 : index
    %c0_17 = arith.constant 0 : index
    %32 = vector.load %arg3[%c6, %c0_16, %c0_17] : memref<9x33x512xf32, #tpu.memory_space<vmem>>, vector<1x33x512xf32>
    %33 = vector.shape_cast %32 : vector<1x33x512xf32> to vector<33x512xf32>
    %34 = arith.mulf %33, %31 : vector<33x512xf32>
    %35 = arith.addf %30, %34 : vector<33x512xf32>
    %c496_i32 = arith.constant 496 : i32
    %36 = tpu.dynamic_rotate %2 by %c496_i32 dim 1 : vector<33x512xf32>, i32 -> vector<33x512xf32>
    %c7 = arith.constant 7 : index
    %c0_18 = arith.constant 0 : index
    %c0_19 = arith.constant 0 : index
    %37 = vector.load %arg3[%c7, %c0_18, %c0_19] : memref<9x33x512xf32, #tpu.memory_space<vmem>>, vector<1x33x512xf32>
    %38 = vector.shape_cast %37 : vector<1x33x512xf32> to vector<33x512xf32>
    %39 = arith.mulf %38, %36 : vector<33x512xf32>
    %40 = arith.addf %35, %39 : vector<33x512xf32>
    %c495_i32 = arith.constant 495 : i32
    %41 = tpu.dynamic_rotate %2 by %c495_i32 dim 1 : vector<33x512xf32>, i32 -> vector<33x512xf32>
    %c8 = arith.constant 8 : index
    %c0_20 = arith.constant 0 : index
    %c0_21 = arith.constant 0 : index
    %42 = vector.load %arg3[%c8, %c0_20, %c0_21] : memref<9x33x512xf32, #tpu.memory_space<vmem>>, vector<1x33x512xf32>
    %43 = vector.shape_cast %42 : vector<1x33x512xf32> to vector<33x512xf32>
    %44 = arith.mulf %43, %41 : vector<33x512xf32>
    %45 = arith.addf %40, %44 : vector<33x512xf32>
    %c0_22 = arith.constant 0 : index
    %c0_23 = arith.constant 0 : index
    %46 = vector.load %arg4[%c0_22, %c0_23] : memref<32x33xbf16, #tpu.memory_space<vmem>>, vector<32x33xbf16>
    %47 = arith.truncf %45 : vector<33x512xf32> to vector<33x512xbf16>
    %cst_24 = arith.constant dense<0.000000e+00> : vector<32x512xf32>
    %48 = tpu.matmul %46, %47, %cst_24 {dimension_numbers = #tpu.dot_dimension_numbers<[1], [0], [0], [1], [0, 0, 1, 1], [], []>} : vector<32x33xbf16>, vector<33x512xbf16>, vector<32x512xf32> -> vector<32x512xf32>
    %c0_25 = arith.constant 0 : index
    %c0_26 = arith.constant 0 : index
    %49 = vector.load %arg5[%c0_25, %c0_26] : memref<32x512xf32, #tpu.memory_space<vmem>>, vector<32x512xf32>
    tpu.vector_store %arg5[%c0_25, %c0_26], %48 {strides = array<i32>} : memref<32x512xf32, #tpu.memory_space<vmem>>, vector<32x512xf32>,
    return
  }
  func.func @transform_0(%arg0: i32) -> (i32, i32) {
    %c0_i32 = arith.constant 0 : i32
    %c0_i32_0 = arith.constant 0 : i32
    return %c0_i32, %arg0 : i32, i32
  }
  func.func @transform_1(%arg0: i32) -> (i32, i32) {
    %c0_i32 = arith.constant 0 : i32
    %c0_i32_0 = arith.constant 0 : i32
    %c0_i32_1 = arith.constant 0 : i32
    return %c0_i32, %c0_i32_0 : i32, i32
  }
  func.func @transform_2(%arg0: i32) -> (i32, i32, i32) {
    %c0_i32 = arith.constant 0 : i32
    %c0_i32_0 = arith.constant 0 : i32
    %c0_i32_1 = arith.constant 0 : i32
    %c0_i32_2 = arith.constant 0 : i32
    return %c0_i32, %c0_i32_0, %c0_i32_1 : i32, i32, i32
  }
  func.func @transform_3(%arg0: i32) -> (i32, i32) {
    %c0_i32 = arith.constant 0 : i32
    %c0_i32_0 = arith.constant 0 : i32
    %c0_i32_1 = arith.constant 0 : i32
    return %c0_i32, %c0_i32_0 : i32, i32
  }
  func.func @transform_4(%arg0: i32) -> (i32, i32) {
    %c0_i32 = arith.constant 0 : i32
    %c0_i32_0 = arith.constant 0 : i32
    return %c0_i32, %arg0 : i32, i32
  }
}

</mosaic_0001>

<bundles_post_ra>
// kernel: tpu_custom_call.1
= control target key start
LH: loop header
LB: loop body
LE: loop exit
PB: predicated region body
PF: predicated region fallthrough
CT: control target
= control target key end

     0   :  { %9 = vsyncpa [#allocation3], 0  ;;  %s2974_s0 = inlined_call_operand.hbm [shape: bf16[33,512], index: 0, kind: input, shape index: {}]   ;;  %s2975_s1 = inlined_call_operand.hbm [shape: bf16[33,33], index: 1, kind: input, shape index: {}]   ;;  %s2976_s2 = inlined_call_operand.hbm [shape: f32[9,33,512], index: 2, kind: input, shape index: {}]   ;;  %s2977_s3 = inlined_call_operand.hbm [shape: bf16[32,33], index: 3, kind: input, shape index: {}]   ;;  %s2978_s4 = inlined_call_operand.hbm [shape: f32[32,512], index: 4, kind: output, shape index: {}]  }
   0x1   :  { %10 = vsyncpa [#allocation6], 0 }
   0x2   :  { %11 = vsyncpa [#allocation9], 0  ;;  %s30_s17 = sshll.u32 %s2975_s1, 4  ;;  %s31_s17 = int_to_ptr.hbm [resolvable:$true] %s30_s17 }
   0x3   :  { %12 = vsyncpa [#allocation4], 0  ;;  %s1679_s18 = smov [#allocation5]   ;;  %s17_s22 = sshll.u32 %s2974_s0, 4  ;;  %s18_s22 = int_to_ptr.hbm [resolvable:$true] %s17_s22 }
   0x4   :  { %s32_s19 = sshll.u32 %s1679_s18, 4  ;;  %s1680_s23 = smov 64   ;;  %s33_s19 = int_to_ptr.vmem [resolvable:$true] %s32_s19 }
   0x5   :  { %s1681_s24 = smov 4   ;;  %s1682_s25 = smov [#allocation2]  }
   0x6   :  { %38 = dma.hbm_to_vmem [thread:$0]  %s31_s17, 320, %s33_s19, [#allocation6], %s1680_s23, %s1680_s23, %s1681_s24  }
   0x7   :  { %s19_s26 = sshll.u32 %s1682_s25, 4  ;;  %s1683_s27 = smov 256   ;;  %s20_s26 = int_to_ptr.vmem [resolvable:$true] %s19_s26 }
   0x8   :  { %s1684_s28 = smov 16   ;;  %s43_s30 = sshll.u32 %s2976_s2, 4  ;;  %s44_s30 = int_to_ptr.hbm [resolvable:$true] %s43_s30 }
   0x9   :  { %25 = dma.hbm_to_vmem [thread:$0]  %s18_s22, 1280, %s20_s26, [#allocation3], %s1683_s27, %s1683_s27, %s1684_s28  }
   0xa   :  { %s1685_s5 = smov [#allocation7]   ;;  %s56_s8 = sshll.u32 %s2977_s3, 4  ;;  %s57_s8 = int_to_ptr.hbm [resolvable:$true] %s56_s8 }
   0xb   :  { %s45_s6 = sshll.u32 %s1685_s5, 4  ;;  %s1686_s9 = smov 512   ;;  %s46_s6 = int_to_ptr.vmem [resolvable:$true] %s45_s6 }
   0xc   :  { %s1687_s10 = smov 32   ;;  %s1688_s11 = smov [#allocation8]  }
   0xd   :  { %51 = dma.hbm_to_vmem [thread:$0]  %s44_s30, 23040, %s46_s6, [#allocation6], %s1686_s9, %s1686_s9, %s1687_s10  }
   0xe   :  { %s58_s12 = sshll.u32 %s1688_s11, 4  ;;  %s59_s12 = int_to_ptr.vmem [resolvable:$true] %s58_s12 }
   0xf   :  { %64 = dma.hbm_to_vmem [thread:$0]  %s57_s8, 256, %s59_s12, [#allocation9], %s1680_s23, %s1680_s23, %s1681_s24  }
  0x10   :  { %1671 = dma.done.wait [#allocation3], 1280  }
  0x11   :  { %1672 = vsyncadd [#allocation3], 4294966016 }
  0x12   :  { %1673 = dma.done.wait [#allocation6], 23360  }
  0x13   :  { %1674 = vsyncadd [#allocation6], 4294943936 }
  0x14   :  { %1675 = dma.done.wait [#allocation9], 256  }
  0x15   :  { %1676 = vsyncadd [#allocation9], 4294967040  ;;  %vm170_vm0 = vcmask 1040384   ;;  %v95_v0 = vld [vmem:[#allocation2 + $0x40] sm:$0x11]  ;;  %v1689_v6 = vmov 0  }
  0x16   :  { %v96_v1 = vld [vmem:[#allocation2 + $0x48] sm:$0x11]  ;;  %v136_v2 = vunpack.c.l.b16 %v95_v0  ;;  %v137_v3 = vunpack.c.h.b16 %v95_v0  ;;  %v1739_v7 = vsel %vm170_vm0, 65535, %v1689_v6  ;;  %v1478_v11 = vld [vmem:[#allocation2 + $0x20] sm:$0xf]  ;;  %v1520_v40 = vld [vmem:[#allocation5] sm:$0xff] }
  0x17   :  { %v138_v4 = vunpack.c.l.b16 %v96_v1  ;;  %v139_v5 = vunpack.c.h.b16 %v96_v1  ;;  %3008 = vst [vmem:[#allocation15_spill] sm:$0xff] %v1739_v7  ;;  %v1528_v12 = vld [vmem:[#allocation2 + $0x2c] sm:$0xf0]  ;;  %v1526_v13 = vld [vmem:[#allocation2 + $0x24] sm:$0xf]  ;;  %vm160_vm1 = vcmask 269312  }
  0x18   :  { %v148_v8 = vpack.c.b16 %v136_v2, %v136_v2  ;;  %v149_v9 = vpack.c.b16 %v137_v3, %v137_v3  ;;  %v1480_v14 = vld [vmem:[#allocation2 + $0x30] sm:$0xf0]  ;;  %v1486_v15 = vld [vmem:[#allocation2 + $0x28] sm:$0xf]  ;;  %v1529_v20 = vld [vmem:[#allocation2 + $0x34] sm:$0xf0]  ;;  %v1479_v24 = vor.u32 %v1528_v12, %v1478_v11 }
  0x19   :  { %v150_v10 = vpack.c.b16 %v138_v4, %v138_v4  ;;  %v151_v16 = vpack.c.b16 %v139_v5, %v139_v5  ;;  %v1527_v21 = vld [vmem:[#allocation2 + $0x2c] sm:$0xf]  ;;  %v1488_v22 = vld [vmem:[#allocation2 + $0x38] sm:$0xf0]  ;;  %v1483_v25 = vor.u32 %v1526_v13, %v1480_v14  ;;  %v1462_v26 = vld [vmem:[#allocation2] sm:$0xf]  ;;  %v1487_v28 = vor.u32 %v1529_v20, %v1486_v15 }
  0x1a   :  { %v174_v17 = vand.u32 %v1739_v7, %v148_v8  ;;  %v177_v18 = vand.u32 %v1739_v7, %v149_v9  ;;  %v1524_v27 = vld [vmem:[#allocation2 + $0xc] sm:$0xf0]  ;;  %v1522_v29 = vld [vmem:[#allocation2 + $0x4] sm:$0xf]  ;;  %v1464_v30 = vld [vmem:[#allocation2 + $0x10] sm:$0xf0]  ;;  %v1491_v32 = vor.u32 %v1527_v21, %v1488_v22 }
  0x1b   :  { %v180_v19 = vand.u32 %v1739_v7, %v150_v10  ;;  %v183_v23 = vand.u32 %v1739_v7, %v151_v16  ;;  %v1470_v31 = vld [vmem:[#allocation2 + $0x8] sm:$0xf]  ;;  %v1525_v33 = vld [vmem:[#allocation2 + $0x14] sm:$0xf0]  ;;  %v1523_v34 = vld [vmem:[#allocation2 + $0xc] sm:$0xf]  ;;  %v1463_v36 = vor.u32 %v1524_v27, %v1462_v26  ;;  %v1467_v37 = vor.u32 %v1522_v29, %v1464_v30 }
  0x1c   :  { %190 = vmatpush.bf16.msra.mxu0 %v174_v17  ;;  %213 = vmatpush.bf16.msra.mxu1 %v177_v18  ;;  %v1472_v35 = vld [vmem:[#allocation2 + $0x18] sm:$0xf0]  ;;  %v1471_v38 = vor.u32 %v1525_v33, %v1470_v31  ;;  %v86_v42 = vld [vmem:[#allocation5 + $0x10] sm:$0x1]  ;;  %s1690_s2 = smov 17   ;;  %s1691_s3 = smov 15  }
  0x1d   :  { %236 = vmatpush.bf16.msra.mxu2 %v180_v19  ;;  %259 = vmatpush.bf16.msra.mxu3 %v183_v23  ;;  %v1475_v39 = vor.u32 %v1523_v34, %v1472_v35  ;;  %v1521_v41 = vld [vmem:[#allocation5 + $0x8] sm:$0xff]  ;;  %v106_v43 = vunpack.c.l.b16 %v86_v42  ;;  %s1692_s13 = smov 1   ;;  %v358_v23 = vlaneseq  ;;  %s1693_s14 = smov 127  }
  0x1e   :  { %v514_v7 = vld [vmem:[#allocation7 + $0xf8] sm:$0xff]  ;;  %s1694_s15 = smov 113   ;;  %s1695_s16 = smov 112  }
  0x1f   :  { %v109_v44 = vpack.c.b16 %v106_v43, %v106_v43  ;;  %s1696_s17 = smov 111   ;;  %s1697_s18 = smov [#allocation10]  }
  0x20   :  { %191 = vmatpush.bf16.msra.mxu0 %v1479_v24  ;;  %214 = vmatpush.bf16.msra.mxu1 %v1483_v25  ;;  %v1943_v25 = vand.u32 127, %v358_v23  ;;  %s1435_s19 = sshll.u32 %s1697_s18, 4  ;;  %s1437_s22 = sshll.u32 %s2978_s4, 4  ;;  %s1436_s19 = int_to_ptr.vmem [resolvable:$true] %s1435_s19  ;;  %s1438_s22 = int_to_ptr.hbm [resolvable:$true] %s1437_s22 }
  0x21   :  { %237 = vmatpush.bf16.msra.mxu2 %v1487_v28  ;;  %260 = vmatpush.bf16.msra.mxu3 %v1491_v32 }
  0x22   :  { %vm603_vm2 = vcmp.lt.s32.totalorder %v1943_v25, 15  ;;  %vm360_vm3 = vcmp.lt.s32.totalorder %v1943_v25, 17  ;;  %vm481_vm4 = vcmp.lt.s32.totalorder %v1943_v25, 16  ;;  %vm725_vm5 = vcmp.lt.s32.totalorder %v1943_v25, 1 }
  0x23   :  { %vm847_vm6 = vcmp.lt.s32.totalorder %v1943_v25, 127  ;;  %vm969_vm7 = vcmp.lt.s32.totalorder %v1943_v25, 113  ;;  %vm1091_vm8 = vcmp.lt.s32.totalorder %v1943_v25, 112  ;;  %vm1213_vm9 = vcmp.lt.s32.totalorder %v1943_v25, 111 }
  0x24   :  { %192 = vmatpush.bf16.msra.mxu0 %v1463_v36  ;;  %215 = vmatpush.bf16.msra.mxu1 %v1467_v37  ;;  %v386_v36 = vld [vmem:[#allocation7 + $0x28] sm:$0xff] }
  0x25   :  { %238 = vmatpush.bf16.msra.mxu2 %v1471_v38  ;;  %261 = vmatpush.bf16.msra.mxu3 %v1475_v39  ;;  %v283_v37 = vld [vmem:[#allocation7 + $0x2a8] sm:$0xff] }
  0x27   :  { %1492 = vmatmul.msk.bf16.vlgmr.msra.gmra.mxu0 %vm160_vm1, %v1520_v40  ;;  %1495 = vmatmul.msk.bf16.vlgmr.msra.gmra.mxu1 %vm160_vm1, %v1520_v40 }
  0x28   :  { %1498 = vmatmul.msk.bf16.vlgmr.msra.gmra.mxu2 %vm160_vm1, %v1520_v40  ;;  %1501 = vmatmul.msk.bf16.vlgmr.msra.gmra.mxu3 %vm160_vm1, %v1520_v40 }
  0x37   :  { %1493 = vmatmul.msk.bf16.gmra.mxu0 %vm160_vm1, %v1521_v41  ;;  %1496 = vmatmul.msk.bf16.gmra.mxu1 %vm160_vm1, %v1521_v41 }
  0x38   :  { %1499 = vmatmul.msk.bf16.gmra.mxu2 %vm160_vm1, %v1521_v41  ;;  %1502 = vmatmul.msk.bf16.gmra.mxu3 %vm160_vm1, %v1521_v41  ;;  %v508_v41 = vld [vmem:[#allocation7 + $0xc8] sm:$0xff] }
  0x47   :  { %1497 = vmatmul.msk.bf16.gmra.mxu1 %vm160_vm1, %v109_v44  ;;  %1494 = vmatmul.msk.bf16.gmra.mxu0 %vm160_vm1, %v109_v44 }
  0x48   :  { %1503 = vmatmul.msk.bf16.gmra.mxu3 %vm160_vm1, %v109_v44  ;;  %1500 = vmatmul.msk.bf16.gmra.mxu2 %vm160_vm1, %v109_v44 }
  0xa4   :  { %v1757_v45 = vpop.f32.mrf.mxu0  ;;  %v1759_v46 = vpop.f32.mrf.mxu1 }
  0xa5   :  { %3009 = vst [vmem:[#allocation16_spill] sm:$0xff] %v1757_v45  ;;  %451 = vrot.lane.b32.xlu1 %v1759_v46, %s1684_s28  ;;  %328 = vrot.lane.b32.xlu2 %v1759_v46, %s1690_s2 }
  0xa6   :  { %3010 = vst [vmem:[#allocation17_spill] sm:$0xff] %v1759_v46  ;;  %318 = vrot.lane.b32.xlu0 %v1757_v45, %s1690_s2 }
  0xab   :  { %v1773_v47 = vpop.f32.mrf.mxu2  ;;  %v1781_v48 = vpop.f32.mrf.mxu3 }
  0xac   :  { %3011 = vst [vmem:[#allocation18_spill] sm:$0xff] %v1773_v47  ;;  %v1795_v49 = vpop.f32.mrf.mxu1  ;;  %v1797_v50 = vpop.f32.mrf.mxu0 }
  0xad   :  { %563 = vrot.lane.b32.xlu1 %v1757_v45, %s1691_s3  ;;  %441 = vrot.lane.b32.xlu2 %v1757_v45, %s1684_s28  ;;  %3012 = vst [vmem:[#allocation19_spill] sm:$0xff] %v1795_v49  ;;  %v303_v42 = vmul.f32 %v283_v37, %v1795_v49 }
  0xae   :  { %573 = vrot.lane.b32.xlu0 %v1759_v46, %s1691_s3  ;;  %3013 = vst [vmem:[#allocation20_spill] sm:$0xff] %v1797_v50 }
  0xb3   :  { %v1811_v51 = vpop.f32.mrf.mxu2  ;;  %v1813_v52 = vpop.f32.mrf.mxu3 }
  0xb4   :  { %3014 = vst [vmem:[#allocation21_spill] sm:$0xff] %v1811_v51  ;;  %v1827_v53 = vpop.f32.mrf.mxu0  ;;  %v1835_v54 = vpop.f32.mrf.mxu1 }
  0xb5   :  { %338 = vrot.lane.b32.xlu1 %v1773_v47, %s1690_s2  ;;  %695 = vrot.lane.b32.xlu2 %v1759_v46, %s1692_s13  ;;  %3015 = vst [vmem:[#allocation22_spill] sm:$0xff] %v1835_v54 }
  0xb6   :  { %685 = vrot.lane.b32.xlu0 %v1757_v45, %s1692_s13 }
  0xbb   :  { %v1851_v56 = vpop.f32.mrf.mxu3  ;;  %v1861_v58 = vpop.f32.mrf.mxu2 }
  0xbc   :  { %v1863_v59 = vpop.f32.mrf.mxu1  ;;  %v1873_v61 = vpop.f32.mrf.mxu0 }
  0xbd   :  { %593 = vrot.lane.b32.xlu1 %v1781_v48, %s1691_s3  ;;  %471 = vrot.lane.b32.xlu2 %v1781_v48, %s1684_s28 }
  0xbe   :  { %348 = vrot.lane.b32.xlu0 %v1781_v48, %s1690_s2 }
  0xc3   :  { %v1903_v8 = vpop.f32.mrf.mxu3  ;;  %v1917_v13 = vpop.f32.mrf.mxu2 }
  0xc4   :  { %v1879_v62 = vpop.f32.mrf.mxu1  ;;  %v1893_v2 = vpop.f32.mrf.mxu0 }
  0xc5   :  { %705 = vrot.lane.b32.xlu1 %v1773_v47, %s1692_s13  ;;  %583 = vrot.lane.b32.xlu2 %v1773_v47, %s1691_s3 }
  0xc6   :  { %461 = vrot.lane.b32.xlu0 %v1773_v47, %s1684_s28 }
  0xcb   :  { %v1919_v14 = vpop.f32.mrf.mxu3  ;;  %v1931_v18 = vpop.f32.mrf.mxu2 }
  0xcc   :  { %v229_v3 = vpop.f32.mrf.mxu1  ;;  %v206_v9 = vpop.f32.mrf.mxu0 }
  0xcd   :  { %575 = vrot.lane.b32.xlu1 %v1795_v49, %s1691_s3  ;;  %453 = vrot.lane.b32.xlu2 %v1795_v49, %s1684_s28  ;;  %v630_v9 = vld [vmem:[#allocation7 + $0x168] sm:$0xff] }
  0xce   :  { %320 = vrot.lane.b32.xlu0 %v1797_v50, %s1690_s2 }
  0xd3   :  { %v275_v19 = vpop.f32.mrf.mxu3  ;;  %v252_v24 = vpop.f32.mrf.mxu2 }
  0xd4   :  { %v387_v19 = vld [vmem:[#allocation7 + $0x30] sm:$0xff] }
  0xd5   :  { %687 = vrot.lane.b32.xlu1 %v1797_v50, %s1692_s13  ;;  %565 = vrot.lane.b32.xlu2 %v1797_v50, %s1691_s3 }
  0xd6   :  { %330 = vrot.lane.b32.xlu0 %v1795_v49, %s1690_s2 }
  0xdd   :  { %350 = vrot.lane.b32.xlu1 %v1813_v52, %s1690_s2  ;;  %340 = vrot.lane.b32.xlu2 %v1811_v51, %s1690_s2 }
  0xde   :  { %443 = vrot.lane.b32.xlu0 %v1797_v50, %s1684_s28 }
  0xe5   :  { %463 = vrot.lane.b32.xlu1 %v1811_v51, %s1684_s28  ;;  %595 = vrot.lane.b32.xlu2 %v1813_v52, %s1691_s3 }
  0xe6   :  { %697 = vrot.lane.b32.xlu0 %v1795_v49, %s1692_s13 }
  0xed   :  { %707 = vrot.lane.b32.xlu2 %v1811_v51, %s1692_s13  ;;  %322 = vrot.lane.b32.xlu1 %v1827_v53, %s1690_s2 }
  0xee   :  { %473 = vrot.lane.b32.xlu0 %v1813_v52, %s1684_s28 }
  0xf5   :  { %577 = vrot.lane.b32.xlu2 %v1835_v54, %s1691_s3  ;;  %332 = vrot.lane.b32.xlu1 %v1835_v54, %s1690_s2 }
  0xf6   :  { %585 = vrot.lane.b32.xlu0 %v1811_v51, %s1691_s3 }
  0xfd   :  { %689 = vrot.lane.b32.xlu2 %v1827_v53, %s1692_s13  ;;  %445 = vrot.lane.b32.xlu1 %v1827_v53, %s1684_s28 }
  0xfe   :  { %455 = vrot.lane.b32.xlu0 %v1835_v54, %s1684_s28 }
  0xff   :  { %v1849_v55 = vpop.permute.xlu2 %328 }
 0x100   :  { %3016 = vst [vmem:[#allocation23_spill] sm:$0xff] %v1849_v55 }
 0x105   :  { %352 = vrot.lane.b32.xlu2 %v1851_v56, %s1690_s2  ;;  %699 = vrot.lane.b32.xlu1 %v1835_v54, %s1692_s13 }
 0x106   :  { %567 = vrot.lane.b32.xlu0 %v1827_v53, %s1691_s3 }
 0x107   :  { %v1859_v57 = vpop.permute.xlu2 %441 }
 0x108   :  { %3017 = vst [vmem:[#allocation24_spill] sm:$0xff] %v1859_v57 }
 0x10d   :  { %465 = vrot.lane.b32.xlu2 %v1861_v58, %s1684_s28  ;;  %475 = vrot.lane.b32.xlu1 %v1851_v56, %s1684_s28 }
 0x10e   :  { %342 = vrot.lane.b32.xlu0 %v1861_v58, %s1690_s2 }
 0x10f   :  { %v1871_v60 = vpop.permute.xlu2 %695 }
 0x110   :  { %3018 = vst [vmem:[#allocation25_spill] sm:$0xff] %v1871_v60 }
 0x115   :  { %334 = vrot.lane.b32.xlu2 %v1863_v59, %s1690_s2  ;;  %587 = vrot.lane.b32.xlu1 %v1861_v58, %s1691_s3 }
 0x116   :  { %597 = vrot.lane.b32.xlu0 %v1851_v56, %s1691_s3 }
 0x117   :  { %v1883_v63 = vpop.permute.xlu1 %451  ;;  %v1885_v0 = vpop.permute.xlu2 %471 }
 0x118   :  { %3019 = vst [vmem:[#allocation26_spill] sm:$0xff] %v1883_v63  ;;  %v1887_v1 = vpop.permute.xlu0 %318 }
 0x119   :  { %3020 = vst [vmem:[#allocation27_spill] sm:$0xff] %v1887_v1 }
 0x11d   :  { %447 = vrot.lane.b32.xlu2 %v1873_v61, %s1684_s28  ;;  %324 = vrot.lane.b32.xlu1 %v1873_v61, %s1690_s2 }
 0x11e   :  { %579 = vrot.lane.b32.xlu0 %v1863_v59, %s1691_s3 }
 0x11f   :  { %v1897_v4 = vpop.permute.xlu1 %563  ;;  %v1899_v5 = vpop.permute.xlu2 %583 }
 0x120   :  { %3021 = vst [vmem:[#allocation28_spill] sm:$0xff] %v1897_v4  ;;  %v1901_v6 = vpop.permute.xlu0 %573 }
 0x121   :  { %3022 = vst [vmem:[#allocation29_spill] sm:$0xff] %v1901_v6  ;;  %v285_v6 = vld [vmem:[#allocation7 + $0x2b8] sm:$0xff] }
 0x125   :  { %701 = vrot.lane.b32.xlu2 %v1863_v59, %s1692_s13  ;;  %457 = vrot.lane.b32.xlu1 %v1863_v59, %s1684_s28 }
 0x126   :  { %691 = vrot.lane.b32.xlu0 %v1873_v61, %s1692_s13 }
 0x127   :  { %v1911_v10 = vpop.permute.xlu1 %338  ;;  %v1913_v11 = vpop.permute.xlu2 %453 }
 0x128   :  { %v1915_v12 = vpop.permute.xlu0 %685 }
 0x129   :  { %3023 = vst [vmem:[#allocation30_spill] sm:$0xff] %v1915_v12 }
 0x12d   :  { %477 = vrot.lane.b32.xlu2 %v1903_v8, %s1684_s28  ;;  %569 = vrot.lane.b32.xlu1 %v1873_v61, %s1691_s3 }
 0x12e   :  { %354 = vrot.lane.b32.xlu0 %v1903_v8, %s1690_s2 }
 0x12f   :  { %v1927_v15 = vpop.permute.xlu1 %593  ;;  %v566_v16 = vpop.permute.xlu2 %565 }
 0x130   :  { %v1929_v17 = vpop.permute.xlu0 %348 }
 0x135   :  { %589 = vrot.lane.b32.xlu2 %v1917_v13, %s1691_s3  ;;  %344 = vrot.lane.b32.xlu1 %v1917_v13, %s1690_s2 }
 0x136   :  { %467 = vrot.lane.b32.xlu0 %v1917_v13, %s1684_s28 }
 0x137   :  { %v1939_v20 = vpop.permute.xlu1 %705  ;;  %v341_v21 = vpop.permute.xlu2 %340 }
 0x138   :  { %v1941_v22 = vpop.permute.xlu0 %461 }
 0x13d   :  { %599 = vrot.lane.b32.xlu1 %v1903_v8, %s1691_s3  ;;  %326 = vrot.lane.b32.xlu2 %v1893_v2, %s1690_s2 }
 0x13e   :  { %336 = vrot.lane.b32.xlu0 %v1879_v62, %s1690_s2 }
 0x13f   :  { %v1952_v26 = vpop.permute.xlu1 %575  ;;  %v1954_v27 = vpop.permute.xlu2 %595 }
 0x140   :  { %v615_v28 = vsel %vm603_vm2, %v566_v16, %v1952_v26  ;;  %v1962_v29 = vsel %vm603_vm2, %v1954_v27, %v566_v16  ;;  %v321_v30 = vpop.permute.xlu0 %320 }
 0x145   :  { %581 = vrot.lane.b32.xlu1 %v1879_v62, %s1691_s3  ;;  %459 = vrot.lane.b32.xlu2 %v1879_v62, %s1684_s28 }
 0x146   :  { %449 = vrot.lane.b32.xlu0 %v1893_v2, %s1684_s28 }
 0x147   :  { %v1970_v31 = vpop.permute.xlu1 %687  ;;  %v1972_v32 = vpop.permute.xlu2 %707 }
 0x148   :  { %v331_v33 = vpop.permute.xlu0 %330 }
 0x149   :  { %v367_v34 = vsel %vm360_vm3, %v331_v33, %v341_v21  ;;  %v372_v35 = vsel %vm360_vm3, %v321_v30, %v331_v33  ;;  %v650_v33 = vmul.f32 %v630_v9, %v615_v28 }
 0x14a   :  { %v406_v38 = vmul.f32 %v386_v36, %v372_v35  ;;  %v284_v35 = vld [vmem:[#allocation7 + $0x2b0] sm:$0xff]  ;;  %v407_v60 = vmul.f32 %v387_v19, %v367_v34 }
 0x14b   :  { %v304_v37 = vmul.f32 %v284_v35, %v1811_v51 }
 0x14c   :  { %v426_v23 = vadd.f32 %v406_v38, %v303_v42  ;;  %v752_v38 = vld [vmem:[#allocation7 + $0x208] sm:$0xff] }
 0x14d   :  { %693 = vrot.lane.b32.xlu1 %v1893_v2, %s1692_s13  ;;  %571 = vrot.lane.b32.xlu2 %v1893_v2, %s1691_s3  ;;  %v427_v42 = vadd.f32 %v407_v60, %v304_v37  ;;  %v510_v37 = vld [vmem:[#allocation7 + $0xd8] sm:$0xff] }
 0x14e   :  { %703 = vrot.lane.b32.xlu0 %v1879_v62, %s1692_s13 }
 0x14f   :  { %v351_v39 = vpop.permute.xlu1 %350  ;;  %v1985_v40 = vpop.permute.xlu2 %577 }
 0x150   :  { %v362_v43 = vsel %vm360_vm3, %v341_v21, %v351_v39  ;;  %v377_v44 = vsel %vm360_vm3, %v351_v39, %v321_v30  ;;  %v444_v3 = vpop.permute.xlu0 %443  ;;  %v509_v21 = vld [vmem:[#allocation7 + $0xd0] sm:$0xff] }
 0x151   :  { %v493_v16 = vsel %vm481_vm4, %v444_v3, %v1913_v11 }
 0x152   :  { %v528_v24 = vmul.f32 %v508_v41, %v493_v16 }
 0x154   :  { %v548_v36 = vadd.f32 %v528_v24, %v426_v23  ;;  %v385_v23 = vld [vmem:[#allocation7 + $0x20] sm:$0xff]  ;;  %v388_v24 = vld [vmem:[#allocation7 + $0x38] sm:$0xff] }
 0x155   :  { %356 = vrot.lane.b32.xlu1 %v1919_v14, %s1690_s2  ;;  %346 = vrot.lane.b32.xlu2 %v1931_v18, %s1690_s2  ;;  %v405_v60 = vmul.f32 %v385_v23, %v377_v44 }
 0x156   :  { %479 = vrot.lane.b32.xlu0 %v1919_v14, %s1684_s28  ;;  %v670_v30 = vadd.f32 %v650_v33, %v548_v36  ;;  %v282_v36 = vld [vmem:[#allocation7 + $0x2a0] sm:$0xff] }
 0x157   :  { %v464_v39 = vpop.permute.xlu1 %463  ;;  %v2003_v41 = vpop.permute.xlu2 %689 }
 0x158   :  { %3024 = vst [vmem:[#allocation31_spill] sm:$0xff] %v2003_v41  ;;  %v488_v28 = vsel %vm481_vm4, %v1913_v11, %v464_v39  ;;  %v698_v34 = vpop.permute.xlu0 %697  ;;  %v408_v11 = vmul.f32 %v388_v24, %v362_v43 }
 0x159   :  { %v529_v9 = vmul.f32 %v509_v21, %v488_v28  ;;  %v737_v16 = vsel %vm725_vm5, %v1970_v31, %v698_v34  ;;  %v507_v21 = vld [vmem:[#allocation7 + $0xc0] sm:$0xff] }
 0x15a   :  { %v772_v19 = vmul.f32 %v752_v38, %v737_v16 }
 0x15b   :  { %v549_v33 = vadd.f32 %v529_v9, %v427_v42  ;;  %v302_v42 = vmul.f32 %v282_v36, %v1797_v50 }
 0x15c   :  { %v2012_v35 = vadd.f32 %v772_v19, %v670_v30  ;;  %v305_v30 = vmul.f32 %v285_v6, %v1813_v52  ;;  %v629_v19 = vld [vmem:[#allocation7 + $0x160] sm:$0xff] }
 0x15d   :  { %469 = vrot.lane.b32.xlu1 %v1931_v18, %s1684_s28  ;;  %601 = vrot.lane.b32.xlu2 %v1919_v14, %s1691_s3  ;;  %v425_v23 = vadd.f32 %v405_v60, %v302_v42  ;;  %v649_v6 = vmul.f32 %v629_v19, %v1962_v29  ;;  %v632_v60 = vld [vmem:[#allocation7 + $0x178] sm:$0xff]  ;;  %v390_v19 = vld [vmem:[#allocation7 + $0x48] sm:$0xff] }
 0x15e   :  { %3025 = vst [vmem:[#allocation32_spill] sm:$0xff] %v2012_v35  ;;  %591 = vrot.lane.b32.xlu0 %v1931_v18, %s1691_s3  ;;  %v428_v24 = vadd.f32 %v408_v11, %v305_v30 }
 0x15f   :  { %v2020_v38 = vpop.permute.xlu2 %352  ;;  %v323_v28 = vpop.permute.xlu1 %322 }
 0x160   :  { %v474_v9 = vpop.permute.xlu0 %473  ;;  %v378_v16 = vsel %vm360_vm3, %v2020_v38, %v323_v28 }
 0x161   :  { %v483_v43 = vsel %vm481_vm4, %v464_v39, %v474_v9  ;;  %v498_v44 = vsel %vm481_vm4, %v474_v9, %v444_v3  ;;  %v631_v3 = vld [vmem:[#allocation7 + $0x170] sm:$0xff] }
 0x162   :  { %v527_v35 = vmul.f32 %v507_v21, %v498_v44  ;;  %v530_v63 = vmul.f32 %v510_v37, %v483_v43 }
 0x164   :  { %v547_v55 = vadd.f32 %v527_v35, %v425_v23  ;;  %v550_v36 = vadd.f32 %v530_v63, %v428_v24  ;;  %v753_v63 = vld [vmem:[#allocation7 + $0x210] sm:$0xff]  ;;  %v732_v35 = vsel %vm725_vm5, %v698_v34, %v1972_v32  ;;  %v512_v24 = vld [vmem:[#allocation7 + $0xe8] sm:$0xff] }
 0x165   :  { %711 = vrot.lane.b32.xlu1 %v1917_v13, %s1692_s13  ;;  %713 = vrot.lane.b32.xlu2 %v1931_v18, %s1692_s13  ;;  %v773_v43 = vmul.f32 %v753_v63, %v732_v35  ;;  %v634_v35 = vld [vmem:[#allocation7 + $0x188] sm:$0xff] }
 0x166   :  { %709 = vrot.lane.b32.xlu0 %v1861_v58, %s1692_s13  ;;  %v2038_v39 = vadd.f32 %v649_v6, %v547_v55 }
 0x167   :  { %v466_v11 = vpop.permute.xlu2 %465  ;;  %v333_v21 = vpop.permute.xlu1 %332 }
 0x168   :  { %v586_v37 = vpop.permute.xlu0 %585  ;;  %v373_v29 = vsel %vm360_vm3, %v323_v28, %v333_v21  ;;  %v287_v28 = vld [vmem:[#allocation7 + $0x2c8] sm:$0xff] }
 0x169   :  { %v605_v30 = vsel %vm603_vm2, %v586_v37, %v1954_v27  ;;  %v610_v55 = vsel %vm603_vm2, %v1952_v26, %v586_v37  ;;  %v410_v34 = vmul.f32 %v390_v19, %v373_v29  ;;  %v389_v19 = vld [vmem:[#allocation7 + $0x40] sm:$0xff] }
 0x16a   :  { %v651_v42 = vmul.f32 %v631_v3, %v610_v55  ;;  %v652_v9 = vmul.f32 %v632_v60, %v605_v30 }
 0x16c   :  { %v671_v44 = vadd.f32 %v651_v42, %v549_v33  ;;  %v2051_v23 = vadd.f32 %v652_v9, %v550_v36  ;;  %v307_v33 = vmul.f32 %v287_v28, %v1835_v54 }
 0x16d   :  { %717 = vrot.lane.b32.xlu1 %v1813_v52, %s1692_s13  ;;  %719 = vrot.lane.b32.xlu2 %v1851_v56, %s1692_s13 }
 0x16e   :  { %715 = vrot.lane.b32.xlu0 %v1781_v48, %s1692_s13  ;;  %v2059_v27 = vadd.f32 %v773_v43, %v671_v44  ;;  %v430_v37 = vadd.f32 %v410_v34, %v307_v33  ;;  %v286_v44 = vld [vmem:[#allocation7 + $0x2c0] sm:$0xff]  ;;  %v409_v34 = vmul.f32 %v389_v19, %v378_v16 }
 0x16f   :  { %v2061_v26 = vpop.permute.xlu2 %334  ;;  %v446_v6 = vpop.permute.xlu1 %445  ;;  %v511_v33 = vld [vmem:[#allocation7 + $0xe0] sm:$0xff] }
 0x170   :  { %3026 = vst [vmem:[#allocation33_spill] sm:$0xff] %v2059_v27  ;;  %v456_v36 = vpop.permute.xlu0 %455 }
 0x171   :  { %v489_v3 = vsel %vm481_vm4, %v456_v36, %v466_v11  ;;  %v494_v60 = vsel %vm481_vm4, %v446_v6, %v456_v36  ;;  %v306_v36 = vmul.f32 %v286_v44, %v1827_v53 }
 0x172   :  { %v532_v29 = vmul.f32 %v512_v24, %v494_v60  ;;  %v288_v24 = vld [vmem:[#allocation7 + $0x2d0] sm:$0xff]  ;;  %v289_v60 = vld [vmem:[#allocation7 + $0x2d8] sm:$0xff] }
 0x173   :  { %v308_v12 = vmul.f32 %v288_v24, %v1861_v58  ;;  %v309_v4 = vmul.f32 %v289_v60, %v1851_v56  ;;  %v635_v24 = vld [vmem:[#allocation7 + $0x190] sm:$0xff]  ;;  %v636_v60 = vld [vmem:[#allocation7 + $0x198] sm:$0xff] }
 0x174   :  { %v552_v63 = vadd.f32 %v532_v29, %v430_v37  ;;  %v391_v37 = vld [vmem:[#allocation7 + $0x50] sm:$0xff]  ;;  %v392_v29 = vld [vmem:[#allocation7 + $0x58] sm:$0xff] }
 0x175   :  { %723 = vrot.lane.b32.xlu1 %v1919_v14, %s1692_s13  ;;  %807 = vrot.lane.b32.xlu2 %v1757_v45, %s1693_s14 }
 0x176   :  { %721 = vrot.lane.b32.xlu0 %v1903_v8, %s1692_s13 }
 0x177   :  { %v2074_v30 = vpop.permute.xlu1 %699  ;;  %v2076_v55 = vpop.permute.xlu2 %447 }
 0x178   :  { %v568_v42 = vpop.permute.xlu0 %567 }
 0x179   :  { %v616_v9 = vsel %vm603_vm2, %v568_v42, %v1985_v40 }
 0x17a   :  { %v654_v43 = vmul.f32 %v634_v35, %v616_v9 }
 0x17c   :  { %v2081_v28 = vadd.f32 %v654_v43, %v552_v63  ;;  %v429_v43 = vadd.f32 %v409_v34, %v306_v36 }
 0x17d   :  { %811 = vrot.lane.b32.xlu1 %v1827_v53, %s1693_s14  ;;  %813 = vrot.lane.b32.xlu2 %v1873_v61, %s1693_s14 }
 0x17e   :  { %3027 = vst [vmem:[#allocation34_spill] sm:$0xff] %v2081_v28  ;;  %809 = vrot.lane.b32.xlu0 %v1797_v50, %s1693_s14  ;;  %v513_v28 = vld [vmem:[#allocation7 + $0xf0] sm:$0xff] }
 0x17f   :  { %v476_v35 = vpop.permute.xlu1 %475  ;;  %v2090_v63 = vpop.permute.xlu2 %701  ;;  %v533_v1 = vmul.f32 %v513_v28, %v489_v3 }
 0x180   :  { %v343_v16 = vpop.permute.xlu0 %342  ;;  %v484_v9 = vsel %vm481_vm4, %v466_v11, %v476_v35  ;;  %v499_v19 = vsel %vm481_vm4, %v476_v35, %v446_v6 }
 0x181   :  { %v363_v27 = vsel %vm360_vm3, %v343_v16, %v2020_v38  ;;  %v368_v44 = vsel %vm360_vm3, %v333_v21, %v343_v16  ;;  %v531_v49 = vmul.f32 %v511_v33, %v499_v19  ;;  %v534_v36 = vmul.f32 %v514_v7, %v484_v9  ;;  %v633_v33 = vld [vmem:[#allocation7 + $0x180] sm:$0xff] }
 0x182   :  { %v411_v50 = vmul.f32 %v391_v37, %v368_v44  ;;  %v412_v11 = vmul.f32 %v392_v29, %v363_v27  ;;  %v291_v44 = vld [vmem:[#allocation7 + $0x2e8] sm:$0xff] }
 0x183   :  { %v551_v57 = vadd.f32 %v531_v49, %v429_v43  ;;  %v394_v43 = vld [vmem:[#allocation7 + $0x68] sm:$0xff] }
 0x184   :  { %v431_v6 = vadd.f32 %v411_v50, %v308_v12  ;;  %v432_v34 = vadd.f32 %v412_v11, %v309_v4 }
 0x185   :  { %817 = vrot.lane.b32.xlu1 %v1759_v46, %s1693_s14  ;;  %835 = vrot.lane.b32.xlu2 %v1931_v18, %s1693_s14  ;;  %v639_v46 = vld [vmem:[#allocation7 + $0x1b0] sm:$0xff] }
 0x186   :  { %v554_v38 = vadd.f32 %v534_v36, %v432_v34  ;;  %815 = vrot.lane.b32.xlu0 %v1893_v2, %s1693_s14  ;;  %v553_v21 = vadd.f32 %v533_v1, %v431_v6  ;;  %v516_v6 = vld [vmem:[#allocation7 + $0x108] sm:$0xff]  ;;  %v311_v34 = vmul.f32 %v291_v44, %v1863_v59 }
 0x187   :  { %v588_v27 = vpop.permute.xlu1 %587  ;;  %v2109_v49 = vpop.permute.xlu2 %477 }
 0x188   :  { %v598_v50 = vpop.permute.xlu0 %597  ;;  %v611_v7 = vsel %vm603_vm2, %v1985_v40, %v588_v27  ;;  %v500_v4 = vsel %vm481_vm4, %v2109_v49, %v2076_v55 }
 0x189   :  { %v621_v12 = vsel %vm603_vm2, %v598_v50, %v568_v42  ;;  %v606_v1 = vsel %vm603_vm2, %v588_v27, %v598_v50  ;;  %v655_v3 = vmul.f32 %v635_v24, %v611_v7  ;;  %v638_v50 = vld [vmem:[#allocation7 + $0x1a8] sm:$0xff]  ;;  %v290_v7 = vld [vmem:[#allocation7 + $0x2e0] sm:$0xff] }
 0x18a   :  { %v653_v28 = vmul.f32 %v633_v33, %v621_v12  ;;  %v656_v37 = vmul.f32 %v636_v60, %v606_v1  ;;  %v393_v12 = vld [vmem:[#allocation7 + $0x60] sm:$0xff]  ;;  %v310_v44 = vmul.f32 %v290_v7, %v1873_v61 }
 0x18b   :  { %v2122_v29 = vadd.f32 %v655_v3, %v553_v21 }
 0x18c   :  { %v2124_v35 = vadd.f32 %v653_v28, %v551_v57  ;;  %v2126_v16 = vadd.f32 %v656_v37, %v554_v38  ;;  %v515_v37 = vld [vmem:[#allocation7 + $0x100] sm:$0xff] }
 0x18d   :  { %937 = vrot.lane.b32.xlu1 %v1893_v2, %s1694_s15  ;;  %957 = vrot.lane.b32.xlu2 %v1931_v18, %s1694_s15 }
 0x18e   :  { %845 = vrot.lane.b32.xlu0 %v1919_v14, %s1693_s14 }
 0x18f   :  { %v2134_v40 = vpop.permute.xlu2 %589  ;;  %v325_v42 = vpop.permute.xlu1 %324 }
 0x190   :  { %v580_v9 = vpop.permute.xlu0 %579  ;;  %v374_v57 = vsel %vm360_vm3, %v325_v42, %v2061_v26 }
 0x191   :  { %v612_v19 = vsel %vm603_vm2, %v580_v9, %v2134_v40  ;;  %v414_v11 = vmul.f32 %v394_v43, %v374_v57 }
 0x192   :  { %v659_v45 = vmul.f32 %v639_v46, %v612_v19 }
 0x193   :  { %v434_v33 = vadd.f32 %v414_v11, %v311_v34  ;;  %v535_v34 = vmul.f32 %v515_v37, %v500_v4 }
 0x195   :  { %1059 = vrot.lane.b32.xlu1 %v1893_v2, %s1695_s16  ;;  %1079 = vrot.lane.b32.xlu2 %v1931_v18, %s1695_s16 }
 0x196   :  { %967 = vrot.lane.b32.xlu0 %v1919_v14, %s1694_s15 }
 0x197   :  { %v458_v36 = vpop.permute.xlu1 %457  ;;  %v2149_v38 = vpop.permute.xlu2 %326 }
 0x198   :  { %v2151_v21 = vpop.permute.xlu0 %691  ;;  %v495_v24 = vsel %vm481_vm4, %v2076_v55, %v458_v36 }
 0x199   :  { %3028 = vst [vmem:[#allocation35_spill] sm:$0xff] %v2151_v21  ;;  %v536_v60 = vmul.f32 %v516_v6, %v495_v24 }
 0x19b   :  { %v556_v27 = vadd.f32 %v536_v60, %v434_v33  ;;  %v292_v33 = vld [vmem:[#allocation7 + $0x2f0] sm:$0xff]  ;;  %v396_v60 = vld [vmem:[#allocation7 + $0x78] sm:$0xff] }
 0x19c   :  { %v312_v37 = vmul.f32 %v292_v33, %v1917_v13 }
 0x19d   :  { %825 = vrot.lane.b32.xlu1 %v1879_v62, %s1693_s14  ;;  %831 = vrot.lane.b32.xlu2 %v1861_v58, %s1693_s14 }
 0x19e   :  { %1089 = vrot.lane.b32.xlu0 %v1919_v14, %s1695_s16 }
 0x19f   :  { %v570_v1 = vpop.permute.xlu1 %569  ;;  %v2162_v3 = vpop.permute.xlu2 %459 }
 0x1a0   :  { %v355_v28 = vpop.permute.xlu0 %354  ;;  %v617_v55 = vsel %vm603_vm2, %v570_v1, %v580_v9  ;;  %v293_v9 = vld [vmem:[#allocation7 + $0x2f8] sm:$0xff] }
 0x1a1   :  { %v379_v57 = vsel %vm360_vm3, %v355_v28, %v325_v42  ;;  %v658_v43 = vmul.f32 %v638_v50, %v617_v55  ;;  %v395_v42 = vld [vmem:[#allocation7 + $0x70] sm:$0xff]  ;;  %v518_v55 = vld [vmem:[#allocation7 + $0x118] sm:$0xff] }
 0x1a2   :  { %v413_v11 = vmul.f32 %v393_v12, %v379_v57  ;;  %v313_v57 = vmul.f32 %v293_v9, %v1903_v8 }
 0x1a3   :  { %v2169_v6 = vadd.f32 %v658_v43, %v556_v27  ;;  %v517_v27 = vld [vmem:[#allocation7 + $0x110] sm:$0xff] }
 0x1a4   :  { %v433_v24 = vadd.f32 %v413_v11, %v310_v44 }
 0x1a5   :  { %3029 = vst [vmem:[#allocation36_spill] sm:$0xff] %v2169_v6  ;;  %841 = vrot.lane.b32.xlu1 %v1851_v56, %s1693_s14  ;;  %843 = vrot.lane.b32.xlu2 %v1903_v8, %s1693_s14 }
 0x1a6   :  { %833 = vrot.lane.b32.xlu0 %v1917_v13, %s1693_s14  ;;  %v555_v50 = vadd.f32 %v535_v34, %v433_v24 }
 0x1a7   :  { %v345_v7 = vpop.permute.xlu1 %344  ;;  %v572_v12 = vpop.permute.xlu2 %571 }
 0x1a8   :  { %v468_v4 = vpop.permute.xlu0 %467  ;;  %v364_v43 = vsel %vm360_vm3, %v345_v7, %v355_v28  ;;  %v369_v44 = vsel %vm360_vm3, %v2061_v26, %v345_v7 }
 0x1a9   :  { %v485_v11 = vsel %vm481_vm4, %v468_v4, %v2109_v49  ;;  %v490_v34 = vsel %vm481_vm4, %v458_v36, %v468_v4  ;;  %v415_v24 = vmul.f32 %v395_v42, %v369_v44  ;;  %v416_v6 = vmul.f32 %v396_v60, %v364_v43  ;;  %v637_v49 = vld [vmem:[#allocation7 + $0x1a0] sm:$0xff]  ;;  %v640_v36 = vld [vmem:[#allocation7 + $0x1b8] sm:$0xff]  ;;  %v398_v4 = vld [vmem:[#allocation7 + $0x88] sm:$0x1] }
 0x1aa   :  { %v537_v33 = vmul.f32 %v517_v27, %v490_v34  ;;  %v538_v21 = vmul.f32 %v518_v55, %v485_v11  ;;  %v520_v43 = vld [vmem:[#allocation7 + $0x128] sm:$0x1] }
 0x1ab   :  { %v435_v9 = vadd.f32 %v415_v24, %v312_v37  ;;  %v436_v54 = vadd.f32 %v416_v6, %v313_v57  ;;  %v295_v57 = vld [vmem:[#allocation7 + $0x308] sm:$0x1] }
 0x1ad   :  { %v557_v28 = vadd.f32 %v537_v33, %v435_v9  ;;  %1201 = vrot.lane.b32.xlu1 %v1931_v18, %s1696_s17  ;;  %1211 = vrot.lane.b32.xlu2 %v1919_v14, %s1696_s17  ;;  %v558_v26 = vadd.f32 %v538_v21, %v436_v54  ;;  %v642_v33 = vld [vmem:[#allocation7 + $0x1c8] sm:$0x1] }
 0x1ae   :  { %1181 = vrot.lane.b32.xlu0 %v1893_v2, %s1696_s17 }
 0x1af   :  { %v600_v42 = vpop.permute.xlu1 %599  ;;  %v347_v60 = vpop.permute.xlu2 %346  ;;  %v2195_v7 = vadd.f32 %v659_v45, %v557_v28 }
 0x1b0   :  { %v337_v6 = vpop.permute.xlu0 %336  ;;  %v607_v46 = vsel %vm603_vm2, %v2134_v40, %v600_v42  ;;  %v622_v19 = vsel %vm603_vm2, %v600_v42, %v570_v1 }
 0x1b1   :  { %v375_v54 = vsel %vm360_vm3, %v2149_v38, %v337_v6  ;;  %v657_v21 = vmul.f32 %v637_v49, %v622_v19  ;;  %v660_v27 = vmul.f32 %v640_v36, %v607_v46  ;;  %v370_v55 = vsel %vm360_vm3, %v337_v6, %v347_v60  ;;  %v764_v6 = vld [vmem:[#allocation7 + $0x268] sm:$0x1] }
 0x1b2   :  { %v418_v40 = vmul.f32 %v398_v4, %v375_v54 }
 0x1b3   :  { %v2207_v45 = vadd.f32 %v657_v21, %v555_v50  ;;  %v2209_v37 = vadd.f32 %v660_v27, %v558_v26  ;;  %v315_v50 = vmul.f32 %v295_v57, %v1879_v62  ;;  %v294_v57 = vld [vmem:[#allocation7 + $0x300] sm:$0x1] }
 0x1b5   :  { %3030 = vst [vmem:[#allocation37_spill] sm:$0xff] %v2207_v45  ;;  %935 = vrot.lane.b32.xlu1 %v1873_v61, %s1694_s15  ;;  %947 = vrot.lane.b32.xlu2 %v1879_v62, %s1694_s15  ;;  %v438_v28 = vadd.f32 %v418_v40, %v315_v50  ;;  %v397_v40 = vld [vmem:[#allocation7 + $0x80] sm:$0x1] }
 0x1b6   :  { %3031 = vst [vmem:[#allocation38_spill] sm:$0xff] %v2209_v37  ;;  %933 = vrot.lane.b32.xlu0 %v1827_v53, %s1694_s15 }
 0x1b7   :  { %v2217_v1 = vpop.permute.xlu1 %581  ;;  %v2219_v44 = vpop.permute.xlu2 %601 }
 0x1b8   :  { %v618_v11 = vsel %vm603_vm2, %v572_v12, %v2217_v1  ;;  %v450_v34 = vpop.permute.xlu0 %449  ;;  %v623_v24 = vsel %vm603_vm2, %v2219_v44, %v572_v12 }
 0x1b9   :  { %v496_v9 = vsel %vm481_vm4, %v450_v34, %v2162_v3  ;;  %v662_v49 = vmul.f32 %v642_v33, %v618_v11 }
 0x1ba   :  { %v540_v26 = vmul.f32 %v520_v43, %v496_v9  ;;  %v755_v43 = vld [vmem:[#allocation7 + $0x220] sm:$0xff] }
 0x1bc   :  { %v560_v36 = vadd.f32 %v540_v26, %v438_v28  ;;  %v519_v28 = vld [vmem:[#allocation7 + $0x120] sm:$0x1] }
 0x1bd   :  { %955 = vrot.lane.b32.xlu1 %v1917_v13, %s1694_s15  ;;  %963 = vrot.lane.b32.xlu2 %v1851_v56, %s1694_s15 }
 0x1be   :  { %953 = vrot.lane.b32.xlu0 %v1861_v58, %s1694_s15  ;;  %v682_v42 = vadd.f32 %v662_v49, %v560_v36  ;;  %v399_v36 = vld [vmem:[#allocation7 + $0x90] sm:$0x1] }
 0x1bf   :  { %v2237_v12 = vpop.permute.xlu1 %693  ;;  %v2239_v46 = vpop.permute.xlu2 %713  ;;  %v419_v37 = vmul.f32 %v399_v36, %v370_v55 }
 0x1c0   :  { %3032 = vst [vmem:[#allocation39_spill] sm:$0xff] %v2237_v12  ;;  %v704_v19 = vpop.permute.xlu0 %703 }
 0x1c1   :  { %v740_v54 = vsel %vm725_vm5, %v2237_v12, %v704_v19  ;;  %v735_v21 = vsel %vm725_vm5, %v704_v19, %v2239_v46 }
 0x1c2   :  { %v784_v27 = vmul.f32 %v764_v6, %v740_v54  ;;  %v314_v6 = vmul.f32 %v294_v57, %v1893_v2  ;;  %v521_v57 = vld [vmem:[#allocation7 + $0x130] sm:$0x1] }
 0x1c4   :  { %v2247_v4 = vadd.f32 %v784_v27, %v682_v42  ;;  %v400_v42 = vld [vmem:[#allocation7 + $0x98] sm:$0x1]  ;;  %v641_v27 = vld [vmem:[#allocation7 + $0x1c0] sm:$0x1] }
 0x1c5   :  { %827 = vrot.lane.b32.xlu1 %v1773_v47, %s1693_s14  ;;  %829 = vrot.lane.b32.xlu2 %v1811_v51, %s1693_s14  ;;  %v297_v51 = vld [vmem:[#allocation7 + $0x318] sm:$0x1] }
 0x1c6   :  { %3033 = vst [vmem:[#allocation40_spill] sm:$0xff] %v2247_v4  ;;  %965 = vrot.lane.b32.xlu0 %v1903_v8, %s1694_s15  ;;  %v296_v4 = vld [vmem:[#allocation7 + $0x310] sm:$0x1] }
 0x1c7   :  { %v357_v50 = vpop.permute.xlu1 %356  ;;  %v2255_v11 = vpop.permute.xlu2 %719  ;;  %v316_v2 = vmul.f32 %v296_v4, %v1931_v18 }
 0x1c8   :  { %v365_v33 = vsel %vm360_vm3, %v347_v60, %v357_v50  ;;  %v380_v9 = vsel %vm360_vm3, %v357_v50, %v2149_v38  ;;  %v480_v26 = vpop.permute.xlu0 %479  ;;  %v743_v49 = vsel %vm725_vm5, %v2255_v11, %v2003_v41  ;;  %v661_v41 = vmul.f32 %v641_v27, %v623_v24  ;;  %v506_v27 = vld [vmem:[#allocation7 + $0xb8] sm:$0xff] }
 0x1c9   :  { %v417_v19 = vmul.f32 %v397_v40, %v380_v9  ;;  %v501_v54 = vsel %vm481_vm4, %v480_v26, %v450_v34  ;;  %v775_v60 = vmul.f32 %v755_v43, %v743_v49  ;;  %v420_v45 = vmul.f32 %v400_v42, %v365_v33 }
 0x1ca   :  { %v539_v50 = vmul.f32 %v519_v28, %v501_v54  ;;  %v317_v34 = vmul.f32 %v297_v51, %v1919_v14  ;;  %v439_v43 = vadd.f32 %v419_v37, %v316_v2  ;;  %v643_v51 = vld [vmem:[#allocation7 + $0x1d0] sm:$0x1]  ;;  %v644_v14 = vld [vmem:[#allocation7 + $0x1d8] sm:$0x1] }
 0x1cb   :  { %v437_v38 = vadd.f32 %v417_v19, %v314_v6  ;;  %v2270_v47 = vadd.f32 %v775_v60, %v2124_v35  ;;  %v522_v35 = vld [vmem:[#allocation7 + $0x138] sm:$0x1] }
 0x1cc   :  { %v440_v33 = vadd.f32 %v420_v45, %v317_v34  ;;  %v765_v45 = vld [vmem:[#allocation7 + $0x270] sm:$0x1]  ;;  %v384_v6 = vld [vmem:[#allocation7 + $0x18] sm:$0xff] }
 0x1cd   :  { %v559_v12 = vadd.f32 %v539_v50, %v437_v38  ;;  %839 = vrot.lane.b32.xlu1 %v1813_v52, %s1693_s14  ;;  %1055 = vrot.lane.b32.xlu2 %v1827_v53, %s1695_s16  ;;  %v785_v19 = vmul.f32 %v765_v45, %v735_v21  ;;  %v482_v21 = vsel %vm481_vm4, %v1941_v22, %v1885_v0  ;;  %v757_v50 = vld [vmem:[#allocation7 + $0x230] sm:$0xff]  ;;  %v758_v2 = vld [vmem:[#allocation7 + $0x238] sm:$0xff] }
 0x1ce   :  { %837 = vrot.lane.b32.xlu0 %v1781_v48, %s1693_s14 }
 0x1cf   :  { %v470_v40 = vpop.permute.xlu1 %469  ;;  %v2280_v55 = vpop.permute.xlu2 %807  ;;  %v2282_v24 = vadd.f32 %v661_v41, %v559_v12 }
 0x1d0   :  { %v486_v9 = vsel %vm481_vm4, %v470_v40, %v480_v26  ;;  %v491_v18 = vsel %vm481_vm4, %v2162_v3, %v470_v40  ;;  %v592_v4 = vpop.permute.xlu0 %591  ;;  %v361_v3 = vsel %vm360_vm3, %v1911_v10, %v1929_v17 }
 0x1d1   :  { %v541_v28 = vmul.f32 %v521_v57, %v491_v18  ;;  %v542_v49 = vmul.f32 %v522_v35, %v486_v9  ;;  %v608_v36 = vsel %vm603_vm2, %v592_v4, %v2219_v44  ;;  %v613_v41 = vsel %vm603_vm2, %v2217_v1, %v592_v4  ;;  %v281_v1 = vld [vmem:[#allocation7 + $0x298] sm:$0xff]  ;;  %v761_v44 = vld [vmem:[#allocation7 + $0x250] sm:$0xff] }
 0x1d2   :  { %v663_v26 = vmul.f32 %v643_v51, %v613_v41  ;;  %v664_v42 = vmul.f32 %v644_v14, %v608_v36  ;;  %v404_v35 = vmul.f32 %v384_v6, %v361_v3  ;;  %v301_v51 = vmul.f32 %v281_v1, %v1781_v48 }
 0x1d3   :  { %v561_v37 = vadd.f32 %v541_v28, %v439_v43  ;;  %v562_v12 = vadd.f32 %v542_v49, %v440_v33  ;;  %v526_v14 = vmul.f32 %v506_v27, %v482_v21 }
 0x1d4   :  { %v424_v36 = vadd.f32 %v404_v35, %v301_v51 }
 0x1d5   :  { %v683_v54 = vadd.f32 %v663_v26, %v561_v37  ;;  %v2299_v60 = vadd.f32 %v664_v42, %v562_v12  ;;  %1069 = vrot.lane.b32.xlu1 %v1879_v62, %s1695_s16  ;;  %1075 = vrot.lane.b32.xlu2 %v1861_v58, %s1695_s16  ;;  %v604_v37 = vsel %vm603_vm2, %v1899_v5, %v1927_v15  ;;  %v754_v12 = vld [vmem:[#allocation7 + $0x218] sm:$0xff] }
 0x1d6   :  { %1057 = vrot.lane.b32.xlu0 %v1873_v61, %s1695_s16  ;;  %v750_v26 = vld [vmem:[#allocation7 + $0x1f8] sm:$0xff] }
 0x1d7   :  { %v712_v38 = vpop.permute.xlu1 %711  ;;  %v2311_v34 = vpop.permute.xlu2 %813  ;;  %v2313_v57 = vadd.f32 %v785_v19, %v683_v54 }
 0x1d8   :  { %v734_v40 = vsel %vm725_vm5, %v2090_v63, %v712_v38  ;;  %v710_v43 = vpop.permute.xlu0 %709 }
 0x1d9   :  { %v781_v33 = vmul.f32 %v761_v44, %v734_v40  ;;  %v728_v9 = vsel %vm725_vm5, %v710_v43, %v2255_v11  ;;  %v733_v18 = vsel %vm725_vm5, %v2074_v30, %v710_v43  ;;  %v628_v11 = vld [vmem:[#allocation7 + $0x158] sm:$0xff]  ;;  %v3036_v40 = vld [vmem:[#allocation22_spill] sm:$0xff]  ;;  %v763_v43 = vld [vmem:[#allocation7 + $0x260] sm:$0x1] }
 0x1da   :  { %v777_v4 = vmul.f32 %v757_v50, %v733_v18  ;;  %v778_v28 = vmul.f32 %v758_v2, %v728_v9  ;;  %v648_v3 = vmul.f32 %v628_v11, %v604_v37  ;;  %v759_v18 = vld [vmem:[#allocation7 + $0x240] sm:$0xff] }
 0x1db   :  { %v2326_v49 = vadd.f32 %v781_v33, %v2195_v7  ;;  %v546_v7 = vadd.f32 %v526_v14, %v424_v36  ;;  %v766_v33 = vld [vmem:[#allocation7 + $0x278] sm:$0x1]  ;;  %v3037_v14 = vld [vmem:[#allocation27_spill] sm:$0xff] }
 0x1dc   :  { %v2329_v41 = vadd.f32 %v777_v4, %v2122_v29  ;;  %v2332_v45 = vadd.f32 %v778_v28, %v2126_v16  ;;  %v751_v29 = vld [vmem:[#allocation7 + $0x200] sm:$0xff]  ;;  %v376_v4 = vsel %vm360_vm3, %v1929_v17, %v3037_v14  ;;  %v3038_v36 = vld [vmem:[#allocation39_spill] sm:$0xff] }
 0x1dd   :  { %1085 = vrot.lane.b32.xlu1 %v1851_v56, %s1695_s16  ;;  %1087 = vrot.lane.b32.xlu2 %v1903_v8, %s1695_s16  ;;  %v668_v21 = vadd.f32 %v648_v3, %v546_v7  ;;  %v278_v3 = vld [vmem:[#allocation7 + $0x280] sm:$0xff] }
 0x1de   :  { %1077 = vrot.lane.b32.xlu0 %v1917_v13, %s1695_s16 }
 0x1df   :  { %v718_v16 = vpop.permute.xlu1 %717  ;;  %v2344_v42 = vpop.permute.xlu2 %835 }
 0x1e0   :  { %v727_v6 = vsel %vm725_vm5, %v1972_v32, %v718_v16  ;;  %v742_v19 = vsel %vm725_vm5, %v718_v16, %v1970_v31  ;;  %v716_v54 = vpop.permute.xlu0 %715  ;;  %v3035_v31 = vld [vmem:[#allocation16_spill] sm:$0xff]  ;;  %v3039_v16 = vld [vmem:[#allocation35_spill] sm:$0xff] }
 0x1e1   :  { %v771_v1 = vmul.f32 %v751_v29, %v742_v19  ;;  %v774_v44 = vmul.f32 %v754_v12, %v727_v6  ;;  %v726_v27 = vsel %vm725_vm5, %v1939_v20, %v716_v54 }
 0x1e2   :  { %v770_v50 = vmul.f32 %v750_v26, %v726_v27 }
 0x1e3   :  { %v2356_v2 = vadd.f32 %v771_v1, %v2038_v39  ;;  %v2359_v35 = vadd.f32 %v774_v44, %v2051_v23  ;;  %v762_v39 = vld [vmem:[#allocation7 + $0x258] sm:$0xff]  ;;  %v381_v23 = vld [vmem:[#allocation7] sm:$0xff] }
 0x1e4   :  { %v2361_v32 = vadd.f32 %v770_v50, %v668_v21  ;;  %v401_v19 = vmul.f32 %v381_v23, %v376_v4  ;;  %v3040_v44 = vld [vmem:[#allocation37_spill] sm:$0xff]  ;;  %v3041_v21 = vld [vmem:[#allocation38_spill] sm:$0xff] }
 0x1e5   :  { %3034 = vst [vmem:[#allocation41_spill] sm:$0xff] %v2356_v2  ;;  %823 = vrot.lane.b32.xlu1 %v1863_v59, %s1693_s14  ;;  %929 = vrot.lane.b32.xlu2 %v3035_v31, %s1694_s15 }
 0x1e6   :  { %821 = vrot.lane.b32.xlu0 %v3036_v40, %s1693_s14 }
 0x1e7   :  { %v724_v9 = vpop.permute.xlu1 %723  ;;  %v2369_v51 = vpop.permute.xlu2 %957 }
 0x1e8   :  { %v730_v28 = vsel %vm725_vm5, %v2239_v46, %v724_v9  ;;  %v745_v11 = vsel %vm725_vm5, %v724_v9, %v3038_v36  ;;  %v722_v37 = vpop.permute.xlu0 %721  ;;  %v503_v9 = vld [vmem:[#allocation7 + $0xa0] sm:$0xff] }
 0x1e9   :  { %v783_v7 = vmul.f32 %v763_v43, %v745_v11  ;;  %v786_v29 = vmul.f32 %v766_v33, %v730_v28  ;;  %v729_v12 = vsel %vm725_vm5, %v712_v38, %v722_v37  ;;  %v744_v26 = vsel %vm725_vm5, %v722_v37, %v3039_v16  ;;  %v3042_v43 = vld [vmem:[#allocation18_spill] sm:$0xff]  ;;  %v3043_v33 = vld [vmem:[#allocation21_spill] sm:$0xff]  ;;  %v3047_v37 = vld [vmem:[#allocation28_spill] sm:$0xff] }
 0x1ea   :  { %v779_v17 = vmul.f32 %v759_v18, %v744_v26  ;;  %v782_v6 = vmul.f32 %v762_v39, %v729_v12  ;;  %v298_v38 = vmul.f32 %v278_v3, %v3035_v31  ;;  %v3044_v18 = vld [vmem:[#allocation24_spill] sm:$0xff]  ;;  %v625_v11 = vld [vmem:[#allocation7 + $0x140] sm:$0xff]  ;;  %v3048_v12 = vld [vmem:[#allocation30_spill] sm:$0xff] }
 0x1eb   :  { %v2387_v46 = vadd.f32 %v783_v7, %v2282_v24  ;;  %v2390_v1 = vadd.f32 %v786_v29, %v2299_v60  ;;  %v497_v24 = vsel %vm481_vm4, %v1885_v0, %v3044_v18  ;;  %v3045_v60 = vld [vmem:[#allocation20_spill] sm:$0xff]  ;;  %v619_v7 = vsel %vm603_vm2, %v1927_v15, %v3047_v37  ;;  %v747_v29 = vld [vmem:[#allocation7 + $0x1e0] sm:$0xff]  ;;  %v887_v37 = vld [vmem:[#allocation7 + $0x3b0] sm:$0x1] }
 0x1ec   :  { %v2393_v27 = vadd.f32 %v779_v17, %v3040_v44  ;;  %v802_v50 = vadd.f32 %v782_v6, %v3041_v21  ;;  %v421_v39 = vadd.f32 %v401_v19, %v298_v38  ;;  %v523_v36 = vmul.f32 %v503_v9, %v497_v24  ;;  %v869_v15 = vld [vmem:[#allocation7 + $0x320] sm:$0xff]  ;;  %v884_v24 = vld [vmem:[#allocation7 + $0x398] sm:$0xff] }
 0x1ed   :  { %949 = vrot.lane.b32.xlu1 %v3042_v43, %s1694_s15  ;;  %951 = vrot.lane.b32.xlu2 %v3043_v33, %s1694_s15  ;;  %v741_v0 = vsel %vm725_vm5, %v716_v54, %v3048_v12  ;;  %v645_v3 = vmul.f32 %v625_v11, %v619_v7 }
 0x1ee   :  { %931 = vrot.lane.b32.xlu0 %v3045_v60, %s1694_s15  ;;  %v543_v26 = vadd.f32 %v523_v36, %v421_v39  ;;  %v767_v17 = vmul.f32 %v747_v29, %v741_v0 }
 0x1ef   :  { %v2407_v23 = vpop.permute.xlu1 %811  ;;  %v2409_v4 = vpop.permute.xlu2 %1079 }
 0x1f0   :  { %v2411_v28 = vpop.permute.xlu0 %809  ;;  %v665_v6 = vadd.f32 %v645_v3, %v543_v26 }
 0x1f1   :  { %3046 = vst [vmem:[#allocation16_spill] sm:$0xff] %v2411_v28 }
 0x1f2   :  { %v787_v38 = vadd.f32 %v767_v17, %v665_v6  ;;  %v1008_v6 = vld [vmem:[#allocation7 + $0x448] sm:$0x1] }
 0x1f5   :  { %961 = vrot.lane.b32.xlu1 %v1813_v52, %s1694_s15  ;;  %1177 = vrot.lane.b32.xlu2 %v1827_v53, %s1696_s17 }
 0x1f6   :  { %959 = vrot.lane.b32.xlu0 %v1781_v48, %s1694_s15 }
 0x1f7   :  { %v2427_v19 = vpop.permute.xlu1 %817  ;;  %v2429_v44 = vpop.permute.xlu2 %831 }
 0x1f8   :  { %v858_v54 = vsel %vm847_vm6, %v2280_v55, %v2427_v19  ;;  %v816_v21 = vpop.permute.xlu0 %815 }
 0x1f9   :  { %v889_v9 = vmul.f32 %v869_v15, %v858_v54  ;;  %v1007_v15 = vld [vmem:[#allocation7 + $0x440] sm:$0x1] }
 0x1fb   :  { %v2435_v53 = vadd.f32 %v889_v9, %v787_v38 }
 0x1fd   :  { %3049 = vst [vmem:[#allocation22_spill] sm:$0xff] %v2435_v53  ;;  %1191 = vrot.lane.b32.xlu1 %v1879_v62, %s1696_s17  ;;  %1197 = vrot.lane.b32.xlu2 %v1861_v58, %s1696_s17 }
 0x1fe   :  { %1179 = vrot.lane.b32.xlu0 %v1873_v61, %s1696_s17 }
 0x1ff   :  { %v938_v39 = vpop.permute.xlu1 %937  ;;  %v844_v36 = vpop.permute.xlu2 %843 }
 0x200   :  { %v846_v11 = vpop.permute.xlu0 %845  ;;  %v866_v7 = vsel %vm847_vm6, %v844_v36, %v2311_v34 }
 0x201   :  { %v904_v29 = vmul.f32 %v884_v24, %v866_v7 }
 0x203   :  { %v2446_v0 = vadd.f32 %v904_v29, %v802_v50  ;;  %v886_v50 = vld [vmem:[#allocation7 + $0x3a8] sm:$0x1]  ;;  %v3051_v29 = vld [vmem:[#allocation40_spill] sm:$0xff] }
 0x205   :  { %3050 = vst [vmem:[#allocation39_spill] sm:$0xff] %v2446_v0  ;;  %1207 = vrot.lane.b32.xlu1 %v1851_v56, %s1696_s17  ;;  %1209 = vrot.lane.b32.xlu2 %v1903_v8, %s1696_s17  ;;  %v885_v56 = vld [vmem:[#allocation7 + $0x3a0] sm:$0x1] }
 0x206   :  { %1199 = vrot.lane.b32.xlu0 %v1917_v13, %s1696_s17 }
 0x207   :  { %v2454_v58 = vpop.permute.xlu1 %1059  ;;  %v2456_v61 = vpop.permute.xlu2 %1211 }
 0x208   :  { %v968_v62 = vpop.permute.xlu0 %967 }
 0x20d   :  { %945 = vrot.lane.b32.xlu1 %v1863_v59, %s1694_s15  ;;  %1051 = vrot.lane.b32.xlu2 %v3035_v31, %s1695_s16 }
 0x20e   :  { %943 = vrot.lane.b32.xlu0 %v3036_v40, %s1694_s15 }
 0x20f   :  { %v826_v8 = vpop.permute.xlu1 %825  ;;  %v948_v13 = vpop.permute.xlu2 %947 }
 0x210   :  { %v857_v26 = vsel %vm847_vm6, %v826_v8, %v2344_v42  ;;  %v862_v3 = vsel %vm847_vm6, %v816_v21, %v826_v8  ;;  %v1090_v17 = vpop.permute.xlu0 %1089  ;;  %v979_v54 = vsel %vm969_vm7, %v948_v13, %v2369_v51  ;;  %v984_v38 = vsel %vm969_vm7, %v938_v39, %v948_v13 }
 0x211   :  { %v905_v9 = vmul.f32 %v885_v56, %v862_v3  ;;  %v906_v24 = vmul.f32 %v886_v50, %v857_v26  ;;  %v1027_v2 = vmul.f32 %v1007_v15, %v984_v38  ;;  %v1028_v12 = vmul.f32 %v1008_v6, %v979_v54  ;;  %v880_v56 = vld [vmem:[#allocation7 + $0x378] sm:$0xff]  ;;  %v1009_v26 = vld [vmem:[#allocation7 + $0x450] sm:$0x1] }
 0x212   :  { %v852_v8 = vsel %vm847_vm6, %v2344_v42, %v846_v11  ;;  %v888_v50 = vld [vmem:[#allocation7 + $0x3b8] sm:$0x1]  ;;  %v867_v13 = vsel %vm847_vm6, %v846_v11, %v816_v21  ;;  %v974_v3 = vsel %vm969_vm7, %v2369_v51, %v968_v62  ;;  %v989_v54 = vsel %vm969_vm7, %v968_v62, %v938_v39 }
 0x213   :  { %v925_v7 = vadd.f32 %v905_v9, %v2387_v46  ;;  %v926_v53 = vadd.f32 %v906_v24, %v3051_v29  ;;  %v879_v46 = vld [vmem:[#allocation7 + $0x370] sm:$0xff]  ;;  %v1010_v6 = vld [vmem:[#allocation7 + $0x458] sm:$0x1]  ;;  %v908_v9 = vmul.f32 %v888_v50, %v867_v13  ;;  %v1111_v0 = vsel %vm1091_vm8, %v1090_v17, %v2454_v58 }
 0x214   :  { %v1131_v24 = vld [vmem:[#allocation7 + $0x4f0] sm:$0x1] }
 0x215   :  { %v2480_v18 = vadd.f32 %v1027_v2, %v925_v7  ;;  %v2482_v14 = vadd.f32 %v1028_v12, %v926_v53  ;;  %1071 = vrot.lane.b32.xlu1 %v3042_v43, %s1695_s16  ;;  %1073 = vrot.lane.b32.xlu2 %v3043_v33, %s1695_s16  ;;  %v883_v2 = vld [vmem:[#allocation7 + $0x390] sm:$0xff]  ;;  %v907_v53 = vmul.f32 %v887_v37, %v852_v8 }
 0x216   :  { %1053 = vrot.lane.b32.xlu0 %v3045_v60, %s1695_s16  ;;  %v1096_v7 = vsel %vm1091_vm8, %v2409_v4, %v1090_v17  ;;  %v1029_v8 = vmul.f32 %v1009_v26, %v974_v3  ;;  %v3052_v13 = vld [vmem:[#allocation19_spill] sm:$0xff]  ;;  %v928_v17 = vadd.f32 %v908_v9, %v2390_v1 }
 0x217   :  { %v842_v42 = vpop.permute.xlu1 %841  ;;  %v2493_v12 = vpop.permute.xlu2 %963  ;;  %v1151_v50 = vmul.f32 %v1131_v24, %v1096_v7  ;;  %v1002_v7 = vld [vmem:[#allocation7 + $0x418] sm:$0xff] }
 0x218   :  { %v850_v15 = vsel %vm847_vm6, %v2429_v44, %v842_v42  ;;  %v865_v21 = vsel %vm847_vm6, %v842_v42, %v2407_v23  ;;  %v2504_v11 = vpop.permute.xlu0 %833  ;;  %v1132_v42 = vld [vmem:[#allocation7 + $0x4f8] sm:$0x1] }
 0x219   :  { %v899_v37 = vmul.f32 %v879_v46, %v850_v15  ;;  %v900_v38 = vmul.f32 %v880_v56, %v865_v21  ;;  %v851_v51 = vsel %vm847_vm6, %v2504_v11, %v844_v36  ;;  %v1030_v46 = vmul.f32 %v1010_v6, %v989_v54 }
 0x21a   :  { %v903_v29 = vmul.f32 %v883_v2, %v851_v51  ;;  %v927_v56 = vadd.f32 %v907_v53, %v2313_v57  ;;  %v1254_v57 = vld [vmem:[#allocation7 + $0x598] sm:$0x1] }
 0x21b   :  { %v919_v39 = vadd.f32 %v899_v37, %v2329_v41  ;;  %v920_v62 = vadd.f32 %v900_v38, %v2332_v45  ;;  %v1152_v41 = vmul.f32 %v1132_v42, %v1111_v0  ;;  %v1253_v45 = vld [vmem:[#allocation7 + $0x590] sm:$0x1]  ;;  %v1050_v26 = vadd.f32 %v1030_v46, %v928_v17 }
 0x21c   :  { %v2520_v36 = vadd.f32 %v903_v29, %v2326_v49  ;;  %v1049_v49 = vadd.f32 %v1029_v8, %v927_v56 }
 0x21d   :  { %1083 = vrot.lane.b32.xlu1 %v1813_v52, %s1695_s16  ;;  %819 = vrot.lane.b32.xlu2 %v3052_v13, %s1693_s14  ;;  %v1172_v6 = vadd.f32 %v1152_v41, %v1050_v26  ;;  %v1001_v41 = vld [vmem:[#allocation7 + $0x410] sm:$0xff] }
 0x21e   :  { %1081 = vrot.lane.b32.xlu0 %v1781_v48, %s1695_s16  ;;  %v1171_v1 = vadd.f32 %v1151_v50, %v1049_v49 }
 0x21f   :  { %v2531_v2 = vpop.permute.xlu1 %1201  ;;  %v2533_v53 = vpop.permute.xlu2 %829 }
 0x220   :  { %3053 = vst [vmem:[#allocation35_spill] sm:$0xff] %v2533_v53  ;;  %v1218_v3 = vsel %vm1213_vm9, %v2531_v2, %v2456_v61  ;;  %v2539_v15 = vpop.permute.xlu0 %1181 }
 0x221   :  { %v1273_v0 = vmul.f32 %v1253_v45, %v1218_v3  ;;  %v1233_v21 = vsel %vm1213_vm9, %v2456_v61, %v2539_v15  ;;  %v3054_v61 = vld [vmem:[#allocation15_spill] sm:$0xff] }
 0x222   :  { %v1274_v54 = vmul.f32 %v1254_v57, %v1233_v21  ;;  %v383_v57 = vld [vmem:[#allocation7 + $0x10] sm:$0xff] }
 0x223   :  { %v1293_v37 = vadd.f32 %v1273_v0, %v1171_v1  ;;  %v505_v1 = vld [vmem:[#allocation7 + $0xb0] sm:$0xff]  ;;  %v3056_v0 = vld [vmem:[#allocation26_spill] sm:$0xff] }
 0x224   :  { %v1294_v38 = vadd.f32 %v1274_v54, %v1172_v6  ;;  %v487_v21 = vsel %vm481_vm4, %v3056_v0, %v1941_v22 }
 0x225   :  { %1067 = vrot.lane.b32.xlu1 %v1863_v59, %s1695_s16  ;;  %1173 = vrot.lane.b32.xlu2 %v3035_v31, %s1696_s17  ;;  %v1309_v51 = vpack.c.bf16 %v1293_v37, %v1293_v37 }
 0x226   :  { %1065 = vrot.lane.b32.xlu0 %v3036_v40, %s1695_s16  ;;  %v1310_v9 = vpack.c.bf16 %v1294_v38, %v1294_v38 }
 0x227   :  { %v2551_v24 = vpop.permute.xlu1 %935  ;;  %v2553_v29 = vpop.permute.xlu2 %1055  ;;  %v1334_v8 = vand.u32 %v1309_v51, %v3054_v61 }
 0x228   :  { %v2556_v42 = vpop.permute.xlu0 %933  ;;  %v1337_v46 = vand.u32 %v1310_v9, %v3054_v61 }
 0x229   :  { %v987_v31 = vsel %vm969_vm7, %v2493_v12, %v2556_v42  ;;  %1382 = vmatpush.bf16.msrb.mxu2 %v1334_v8 }
 0x22a   :  { %v1022_v56 = vmul.f32 %v1002_v7, %v987_v31  ;;  %1401 = vmatpush.bf16.msrb.mxu3 %v1337_v46  ;;  %v3058_v7 = vld [vmem:[#allocation29_spill] sm:$0xff] }
 0x22b   :  { %v3059_v31 = vld [vmem:[#allocation25_spill] sm:$0xff] }
 0x22c   :  { %v2563_v50 = vadd.f32 %v1022_v56, %v920_v62  ;;  %v3055_v62 = vld [vmem:[#allocation23_spill] sm:$0xff]  ;;  %v731_v56 = vsel %vm725_vm5, %v3059_v31, %v1939_v20 }
 0x22d   :  { %1193 = vrot.lane.b32.xlu1 %v3042_v43, %s1696_s17  ;;  %1195 = vrot.lane.b32.xlu2 %v3043_v33, %s1696_s17  ;;  %v366_v26 = vsel %vm360_vm3, %v3055_v62, %v1911_v10  ;;  %v3057_v10 = vld [vmem:[#allocation17_spill] sm:$0xff] }
 0x22e   :  { %1175 = vrot.lane.b32.xlu0 %v3045_v60, %s1696_s17  ;;  %v280_v60 = vld [vmem:[#allocation7 + $0x290] sm:$0xff]  ;;  %v403_v6 = vmul.f32 %v383_v57, %v366_v26 }
 0x22f   :  { %v2571_v17 = vpop.permute.xlu1 %955  ;;  %v2573_v45 = vpop.permute.xlu2 %1075  ;;  %v300_v37 = vmul.f32 %v280_v60, %v3042_v43  ;;  %v609_v43 = vsel %vm603_vm2, %v3058_v7, %v1899_v5  ;;  %v876_v5 = vld [vmem:[#allocation7 + $0x358] sm:$0xff]  ;;  %v871_v26 = vld [vmem:[#allocation7 + $0x330] sm:$0xff] }
 0x230   :  { %v2575_v49 = vpop.permute.xlu0 %953 }
 0x231   :  { %v972_v33 = vsel %vm969_vm7, %v2575_v49, %v2493_v12  ;;  %v525_v12 = vmul.f32 %v505_v1, %v487_v21  ;;  %v423_v9 = vadd.f32 %v403_v6, %v300_v37 }
 0x232   :  { %v1021_v3 = vmul.f32 %v1001_v41, %v972_v33  ;;  %v875_v41 = vld [vmem:[#allocation7 + $0x350] sm:$0xff]  ;;  %v872_v33 = vld [vmem:[#allocation7 + $0x338] sm:$0xff] }
 0x233   :  { %v545_v8 = vadd.f32 %v525_v12, %v423_v9 }
 0x234   :  { %v2589_v54 = vadd.f32 %v1021_v3, %v919_v39 }
 0x235   :  { %1205 = vrot.lane.b32.xlu1 %v1813_v52, %s1696_s17  ;;  %939 = vrot.lane.b32.xlu2 %v3057_v10, %s1694_s15  ;;  %v627_v52 = vld [vmem:[#allocation7 + $0x150] sm:$0xff] }
 0x236   :  { %1203 = vrot.lane.b32.xlu0 %v1781_v48, %s1696_s17  ;;  %v647_v46 = vmul.f32 %v627_v52, %v609_v43  ;;  %v749_v48 = vld [vmem:[#allocation7 + $0x1f0] sm:$0xff]  ;;  %v3060_v43 = vld [vmem:[#allocation33_spill] sm:$0xff] }
 0x237   :  { %v828_v38 = vpop.permute.xlu1 %827  ;;  %v2598_v51 = vpop.permute.xlu2 %1087  ;;  %v769_v60 = vmul.f32 %v749_v48, %v731_v56 }
 0x238   :  { %v2603_v22 = vsel %vm847_vm6, %v2427_v19, %v828_v38  ;;  %v2605_v39 = vpop.permute.xlu0 %965  ;;  %v667_v19 = vadd.f32 %v647_v46, %v545_v8 }
 0x23a   :  { %v789_v12 = vadd.f32 %v769_v60, %v667_v19  ;;  %v760_v60 = vld [vmem:[#allocation7 + $0x248] sm:$0xff] }
 0x23d   :  { %1187 = vrot.lane.b32.xlu1 %v3036_v40, %s1696_s17  ;;  %1189 = vrot.lane.b32.xlu2 %v1863_v59, %s1696_s17 }
 0x23e   :  { %941 = vrot.lane.b32.xlu0 %v3052_v13, %s1694_s15 }
 0x23f   :  { %v840_v57 = vpop.permute.xlu1 %839  ;;  %v2621_v3 = vpop.permute.xlu2 %929 }
 0x240   :  { %v849_v20 = vsel %vm847_vm6, %v2533_v53, %v840_v57  ;;  %v864_v59 = vsel %vm847_vm6, %v840_v57, %v2411_v28  ;;  %v838_v40 = vpop.permute.xlu0 %837  ;;  %v1124_v53 = vld [vmem:[#allocation7 + $0x4b8] sm:$0xff] }
 0x241   :  { %v895_v1 = vmul.f32 %v875_v41, %v849_v20  ;;  %v896_v21 = vmul.f32 %v876_v5, %v864_v59  ;;  %v848_v6 = vsel %vm847_vm6, %v828_v38, %v838_v40  ;;  %v863_v37 = vsel %vm847_vm6, %v838_v40, %v2280_v55  ;;  %v1129_v55 = vld [vmem:[#allocation7 + $0x4e0] sm:$0x1]  ;;  %v756_v20 = vld [vmem:[#allocation7 + $0x228] sm:$0xff]  ;;  %v3061_v59 = vld [vmem:[#allocation31_spill] sm:$0xff] }
 0x242   :  { %v891_v9 = vmul.f32 %v871_v26, %v848_v6  ;;  %v892_v52 = vmul.f32 %v872_v33, %v863_v37  ;;  %v877_v6 = vld [vmem:[#allocation7 + $0x360] sm:$0xff]  ;;  %v878_v37 = vld [vmem:[#allocation7 + $0x368] sm:$0xff] }
 0x243   :  { %v2635_v8 = vadd.f32 %v895_v1, %v3060_v43  ;;  %v2638_v46 = vadd.f32 %v896_v21, %v2359_v35  ;;  %v882_v1 = vld [vmem:[#allocation7 + $0x388] sm:$0xff] }
 0x244   :  { %v911_v48 = vadd.f32 %v891_v9, %v789_v12  ;;  %v2641_v56 = vadd.f32 %v892_v52, %v2361_v32  ;;  %v3062_v52 = vld [vmem:[#allocation36_spill] sm:$0xff] }
 0x245   :  { %1063 = vrot.lane.b32.xlu1 %v3052_v13, %s1695_s16  ;;  %1183 = vrot.lane.b32.xlu2 %v3057_v10, %s1696_s17 }
 0x246   :  { %1061 = vrot.lane.b32.xlu0 %v3057_v10, %s1695_s16 }
 0x247   :  { %v1070_v38 = vpop.permute.xlu1 %1069  ;;  %v2649_v19 = vpop.permute.xlu2 %951 }
 0x248   :  { %v1106_v35 = vsel %vm1091_vm8, %v2454_v58, %v1070_v38  ;;  %v2654_v41 = vpop.permute.xlu0 %1057  ;;  %v739_v58 = vsel %vm725_vm5, %v3039_v16, %v2090_v63 }
 0x249   :  { %v1149_v32 = vmul.f32 %v1129_v55, %v1106_v35  ;;  %v780_v40 = vmul.f32 %v760_v60, %v739_v58  ;;  %v3063_v58 = vld [vmem:[#allocation34_spill] sm:$0xff] }
 0x24b   :  { %v2657_v5 = vadd.f32 %v1149_v32, %v2480_v18  ;;  %v738_v18 = vsel %vm725_vm5, %v3061_v59, %v2074_v30  ;;  %v800_v43 = vadd.f32 %v780_v40, %v3062_v52  ;;  %v1101_v52 = vsel %vm1091_vm8, %v1070_v38, %v2409_v4 }
 0x24c   :  { %v776_v9 = vmul.f32 %v756_v20, %v738_v18  ;;  %v973_v4 = vsel %vm969_vm7, %v2571_v17, %v2605_v39 }
 0x24e   :  { %1185 = vrot.lane.b32.xlu0 %v3052_v13, %s1696_s17  ;;  %v881_v13 = vld [vmem:[#allocation7 + $0x380] sm:$0xff]  ;;  %v796_v20 = vadd.f32 %v776_v9, %v3063_v58  ;;  %v1130_v9 = vld [vmem:[#allocation7 + $0x4e8] sm:$0x1] }
 0x24f   :  { %v2661_v57 = vpop.permute.xlu1 %1085  ;;  %v2663_v26 = vpop.permute.xlu2 %1177 }
 0x250   :  { %v2665_v33 = vpop.permute.xlu0 %1077 }
 0x257   :  { %v824_v21 = vpop.permute.xlu1 %823  ;;  %v2675_v12 = vpop.permute.xlu2 %1197 }
 0x258   :  { %v856_v63 = vsel %vm847_vm6, %v824_v21, %v2504_v11  ;;  %v861_v16 = vsel %vm847_vm6, %v2311_v34, %v824_v21  ;;  %v822_v30 = vpop.permute.xlu0 %821 }
 0x259   :  { %v901_v55 = vmul.f32 %v881_v13, %v861_v16  ;;  %v902_v35 = vmul.f32 %v882_v1, %v856_v63  ;;  %v855_v32 = vsel %vm847_vm6, %v822_v30, %v2429_v44  ;;  %v860_v60 = vsel %vm847_vm6, %v2407_v23, %v822_v30  ;;  %v1251_v30 = vld [vmem:[#allocation7 + $0x580] sm:$0x1] }
 0x25a   :  { %v897_v59 = vmul.f32 %v877_v6, %v860_v60  ;;  %v898_v18 = vmul.f32 %v878_v37, %v855_v32  ;;  %v993_v6 = vld [vmem:[#allocation7 + $0x3d0] sm:$0xff]  ;;  %v1150_v16 = vmul.f32 %v1130_v9, %v1101_v52  ;;  %v988_v32 = vsel %vm969_vm7, %v2605_v39, %v2551_v24 }
 0x25b   :  { %v2692_v11 = vadd.f32 %v901_v55, %v2393_v27  ;;  %v2694_v40 = vadd.f32 %v902_v35, %v800_v43  ;;  %v1252_v55 = vld [vmem:[#allocation7 + $0x588] sm:$0x1]  ;;  %v1006_v35 = vld [vmem:[#allocation7 + $0x438] sm:$0xff]  ;;  %v1123_v9 = vld [vmem:[#allocation7 + $0x4b0] sm:$0xff]  ;;  %v1094_v39 = vsel %vm1091_vm8, %v2573_v45, %v2661_v57 }
 0x25c   :  { %v2697_v34 = vadd.f32 %v897_v59, %v2270_v47  ;;  %v2699_v13 = vadd.f32 %v898_v18, %v796_v20  ;;  %v1005_v20 = vld [vmem:[#allocation7 + $0x430] sm:$0xff]  ;;  %v1026_v28 = vmul.f32 %v1006_v35, %v988_v32 }
 0x25d   :  { %3064 = vst [vmem:[#allocation37_spill] sm:$0xff] %v2692_v11  ;;  %v1246_v11 = vld [vmem:[#allocation7 + $0x558] sm:$0xff] }
 0x25e   :  { %3065 = vst [vmem:[#allocation38_spill] sm:$0xff] %v2694_v40  ;;  %v1245_v40 = vld [vmem:[#allocation7 + $0x550] sm:$0xff] }
 0x25f   :  { %3066 = vst [vmem:[#allocation18_spill] sm:$0xff] %v2697_v34  ;;  %v2701_v1 = vpop.permute.xlu1 %949  ;;  %v2703_v44 = vpop.permute.xlu2 %1209 }
 0x260   :  { %3067 = vst [vmem:[#allocation21_spill] sm:$0xff] %v2699_v13  ;;  %v2705_v21 = vpop.permute.xlu0 %931 }
 0x267   :  { %v2707_v23 = vpop.permute.xlu1 %961  ;;  %v2709_v37 = vpop.permute.xlu2 %1051 }
 0x268   :  { %v2711_v27 = vpop.permute.xlu0 %959 }
 0x269   :  { %v970_v47 = vsel %vm969_vm7, %v2701_v1, %v2711_v27 }
 0x26a   :  { %v1013_v43 = vmul.f32 %v993_v6, %v970_v47  ;;  %v1170_v6 = vadd.f32 %v1150_v16, %v2482_v14  ;;  %v1128_v47 = vld [vmem:[#allocation7 + $0x4d8] sm:$0xff]  ;;  %v1095_v14 = vsel %vm1091_vm8, %v2665_v33, %v2598_v51 }
 0x26c   :  { %v2720_v63 = vadd.f32 %v1013_v43, %v911_v48  ;;  %v1110_v48 = vsel %vm1091_vm8, %v2598_v51, %v2654_v41 }
 0x26d   :  { %v1148_v34 = vmul.f32 %v1128_v47, %v1110_v48  ;;  %v1249_v48 = vld [vmem:[#allocation7 + $0x570] sm:$0xff] }
 0x26f   :  { %v1192_v60 = vpop.permute.xlu1 %1191  ;;  %v2726_v58 = vpop.permute.xlu2 %1073 }
 0x270   :  { %v1223_v38 = vsel %vm1213_vm9, %v1192_v60, %v2531_v2  ;;  %v1228_v59 = vsel %vm1213_vm9, %v2539_v15, %v1192_v60  ;;  %v2742_v18 = vpop.permute.xlu0 %1179  ;;  %v1109_v2 = vsel %vm1091_vm8, %v2661_v57, %v2553_v29  ;;  %v1025_v15 = vmul.f32 %v1005_v20, %v973_v4  ;;  %v1127_v60 = vld [vmem:[#allocation7 + $0x4d0] sm:$0xff] }
 0x271   :  { %v1271_v52 = vmul.f32 %v1251_v30, %v1228_v59  ;;  %v1272_v43 = vmul.f32 %v1252_v55, %v1223_v38  ;;  %v1143_v30 = vmul.f32 %v1123_v9, %v1094_v39  ;;  %v1250_v55 = vld [vmem:[#allocation7 + $0x578] sm:$0xff]  ;;  %v1232_v35 = vsel %vm1213_vm9, %v2703_v44, %v2742_v18  ;;  %v3068_v4 = vld [vmem:[#allocation39_spill] sm:$0xff] }
 0x272   :  { %v1144_v32 = vmul.f32 %v1124_v53, %v1109_v2  ;;  %v1046_v38 = vadd.f32 %v1026_v28, %v3068_v4  ;;  %v1147_v59 = vmul.f32 %v1127_v60, %v1095_v14  ;;  %v1045_v51 = vadd.f32 %v1025_v15, %v2520_v36 }
 0x273   :  { %v1291_v16 = vadd.f32 %v1271_v52, %v2657_v5  ;;  %v1292_v13 = vadd.f32 %v1272_v43, %v1170_v6  ;;  %v1270_v5 = vmul.f32 %v1250_v55, %v1232_v35  ;;  %v1163_v53 = vadd.f32 %v1143_v30, %v2589_v54 }
 0x274   :  { %v1168_v52 = vadd.f32 %v1148_v34, %v1046_v38  ;;  %v1164_v43 = vadd.f32 %v1144_v32, %v2563_v50  ;;  %v1167_v54 = vadd.f32 %v1147_v59, %v1045_v51  ;;  %v504_v59 = vld [vmem:[#allocation7 + $0xa8] sm:$0xff]  ;;  %v3070_v51 = vld [vmem:[#allocation24_spill] sm:$0xff] }
 0x275   :  { %v1307_v57 = vpack.c.bf16 %v1291_v16, %v1291_v16  ;;  %v1308_v20 = vpack.c.bf16 %v1292_v13, %v1292_v13 }
 0x276   :  { %v1290_v16 = vadd.f32 %v1270_v5, %v1168_v52  ;;  %v492_v5 = vsel %vm481_vm4, %v3070_v51, %v3056_v0  ;;  %v1119_v51 = vld [vmem:[#allocation7 + $0x490] sm:$0xff] }
 0x277   :  { %v1208_v6 = vpop.permute.xlu1 %1207  ;;  %v2764_v47 = vpop.permute.xlu2 %819  ;;  %v1328_v9 = vand.u32 %v1307_v57, %v3054_v61  ;;  %v1331_v39 = vand.u32 %v1308_v20, %v3054_v61  ;;  %v279_v20 = vld [vmem:[#allocation7 + $0x288] sm:$0xff]  ;;  %v524_v0 = vmul.f32 %v504_v59, %v492_v5  ;;  %v985_v59 = vsel %vm969_vm7, %v2711_v27, %v2621_v3 }
 0x278   :  { %v1216_v28 = vsel %vm1213_vm9, %v2675_v12, %v1208_v6  ;;  %v1231_v36 = vsel %vm1213_vm9, %v1208_v6, %v2663_v26  ;;  %v2775_v13 = vpop.permute.xlu0 %1199  ;;  %v299_v38 = vmul.f32 %v279_v20, %v3057_v10  ;;  %v626_v6 = vld [vmem:[#allocation7 + $0x148] sm:$0xff]  ;;  %v997_v20 = vld [vmem:[#allocation7 + $0x3f0] sm:$0xff] }
 0x279   :  { %v1265_v2 = vmul.f32 %v1245_v40, %v1216_v28  ;;  %v1266_v15 = vmul.f32 %v1246_v11, %v1231_v36  ;;  %v1217_v61 = vsel %vm1213_vm9, %v2775_v13, %v2703_v44  ;;  %1344 = vmatpush.bf16.msrb.mxu0 %v1328_v9  ;;  %1363 = vmatpush.bf16.msrb.mxu1 %v1331_v39  ;;  %v382_v40 = vld [vmem:[#allocation7 + $0x8] sm:$0xff]  ;;  %v3069_v44 = vld [vmem:[#allocation27_spill] sm:$0xff] }
 0x27a   :  { %v1269_v34 = vmul.f32 %v1249_v48, %v1217_v61  ;;  %v371_v32 = vsel %vm360_vm3, %v3069_v44, %v3055_v62  ;;  %v3071_v48 = vld [vmem:[#allocation28_spill] sm:$0xff]  ;;  %v748_v10 = vld [vmem:[#allocation7 + $0x1e8] sm:$0xff] }
 0x27b   :  { %v1285_v60 = vadd.f32 %v1265_v2, %v1163_v53  ;;  %v1286_v14 = vadd.f32 %v1266_v15, %v1164_v43  ;;  %v402_v4 = vmul.f32 %v382_v40, %v371_v32  ;;  %v614_v9 = vsel %vm603_vm2, %v3071_v48, %v3058_v7  ;;  %v3072_v28 = vld [vmem:[#allocation30_spill] sm:$0xff] }
 0x27c   :  { %v1289_v30 = vadd.f32 %v1269_v34, %v1167_v54  ;;  %v736_v36 = vsel %vm725_vm5, %v3072_v28, %v3059_v31  ;;  %v646_v43 = vmul.f32 %v626_v6, %v614_v9  ;;  %v870_v2 = vld [vmem:[#allocation7 + $0x328] sm:$0xff]  ;;  %v1120_v6 = vld [vmem:[#allocation7 + $0x498] sm:$0xff] }
 0x27d   :  { %v1306_v55 = vpack.c.bf16 %v1290_v16, %v1286_v14  ;;  %v422_v62 = vadd.f32 %v402_v4, %v299_v38  ;;  %v768_v61 = vmul.f32 %v748_v10, %v736_v36  ;;  %v890_v7 = vmul.f32 %v870_v2, %v2603_v22  ;;  %v998_v22 = vld [vmem:[#allocation7 + $0x3f8] sm:$0xff] }
 0x27e   :  { %v1305_v35 = vpack.c.bf16 %v1289_v30, %v1285_v60  ;;  %v992_v60 = vld [vmem:[#allocation7 + $0x3c8] sm:$0xff]  ;;  %v971_v4 = vsel %vm969_vm7, %v2649_v19, %v2707_v23  ;;  %v986_v38 = vsel %vm969_vm7, %v2707_v23, %v2705_v21  ;;  %v1116_v23 = vld [vmem:[#allocation7 + $0x478] sm:$0xff] }
 0x27f   :  { %v946_v57 = vpop.permute.xlu1 %945  ;;  %1402 = vmatpush.bf16.msrb.mxu3 %v1306_v55  ;;  %v2782_v50 = vpop.permute.xlu2 %1173  ;;  %v544_v15 = vadd.f32 %v524_v0, %v422_v62  ;;  %v1115_v62 = vld [vmem:[#allocation7 + $0x470] sm:$0xff]  ;;  %v1017_v36 = vmul.f32 %v997_v20, %v971_v4  ;;  %v1018_v0 = vmul.f32 %v998_v22, %v986_v38  ;;  %v1125_v20 = vld [vmem:[#allocation7 + $0x4c0] sm:$0xff] }
 0x280   :  { %v2784_v11 = vpop.permute.xlu0 %943  ;;  %1383 = vmatpush.bf16.msrb.mxu2 %v1305_v35  ;;  %v978_v2 = vsel %vm969_vm7, %v946_v57, %v2571_v17  ;;  %v1241_v38 = vld [vmem:[#allocation7 + $0x530] sm:$0xff] }
 0x281   :  { %v666_v54 = vadd.f32 %v646_v43, %v544_v15  ;;  %v983_v15 = vsel %vm969_vm7, %v2551_v24, %v946_v57  ;;  %v1038_v17 = vadd.f32 %v1018_v0, %v2638_v46  ;;  %v977_v22 = vsel %vm969_vm7, %v2784_v11, %v2575_v49 }
 0x283   :  { %v788_v16 = vadd.f32 %v768_v61, %v666_v54  ;;  %v982_v61 = vsel %vm969_vm7, %v2556_v42, %v2784_v11  ;;  %v1003_v54 = vld [vmem:[#allocation7 + $0x420] sm:$0xff] }
 0x284   :  { %v1023_v57 = vmul.f32 %v1003_v54, %v983_v15 }
 0x285   :  { %v910_v31 = vadd.f32 %v890_v7, %v788_v16  ;;  %v1004_v7 = vld [vmem:[#allocation7 + $0x428] sm:$0xff] }
 0x286   :  { %v1024_v42 = vmul.f32 %v1004_v7, %v978_v2 }
 0x287   :  { %v2799_v39 = vpop.permute.xlu1 %1071  ;;  %v2801_v52 = vpop.permute.xlu2 %1195 }
 0x288   :  { %v2803_v53 = vpop.permute.xlu0 %1053 }
 0x28f   :  { %v1084_v34 = vpop.permute.xlu1 %1083  ;;  %v2810_v14 = vpop.permute.xlu2 %939 }
 0x290   :  { %v1082_v30 = vpop.permute.xlu0 %1081  ;;  %v975_v55 = vsel %vm969_vm7, %v2810_v14, %v2701_v1  ;;  %v994_v1 = vld [vmem:[#allocation7 + $0x3d8] sm:$0xff]  ;;  %v1093_v48 = vsel %vm1091_vm8, %v2726_v58, %v1084_v34  ;;  %v1108_v9 = vsel %vm1091_vm8, %v1084_v34, %v2803_v53  ;;  %v999_v34 = vld [vmem:[#allocation7 + $0x400] sm:$0xff] }
 0x291   :  { %v1012_v35 = vmul.f32 %v992_v60, %v975_v55  ;;  %v1092_v10 = vsel %vm1091_vm8, %v2799_v39, %v1082_v30  ;;  %v1107_v27 = vsel %vm1091_vm8, %v1082_v30, %v2709_v37  ;;  %v1014_v43 = vmul.f32 %v994_v1, %v985_v59  ;;  %v1242_v1 = vld [vmem:[#allocation7 + $0x538] sm:$0xff] }
 0x292   :  { %v1139_v60 = vmul.f32 %v1119_v51, %v1093_v48  ;;  %v1140_v16 = vmul.f32 %v1120_v6, %v1108_v9  ;;  %v1135_v30 = vmul.f32 %v1115_v62, %v1092_v10  ;;  %v1136_v55 = vmul.f32 %v1116_v23, %v1107_v27  ;;  %v1237_v6 = vld [vmem:[#allocation7 + $0x510] sm:$0xff]  ;;  %v1238_v48 = vld [vmem:[#allocation7 + $0x518] sm:$0xff]  ;;  %v1000_v9 = vld [vmem:[#allocation7 + $0x408] sm:$0xff] }
 0x293   :  { %v2816_v40 = vadd.f32 %v1012_v35, %v910_v31  ;;  %v1037_v31 = vadd.f32 %v1017_v36, %v2635_v8  ;;  %v1034_v35 = vadd.f32 %v1014_v43, %v2641_v56  ;;  %v1019_v4 = vmul.f32 %v999_v34, %v982_v61  ;;  %v1122_v43 = vld [vmem:[#allocation7 + $0x4a8] sm:$0xff] }
 0x294   :  { %v1160_v59 = vadd.f32 %v1140_v16, %v1038_v17  ;;  %v1155_v46 = vadd.f32 %v1135_v30, %v2720_v63  ;;  %v1020_v7 = vmul.f32 %v1000_v9, %v977_v22  ;;  %v3073_v30 = vld [vmem:[#allocation37_spill] sm:$0xff] }
 0x295   :  { %v1159_v8 = vadd.f32 %v1139_v60, %v1037_v31  ;;  %v1156_v56 = vadd.f32 %v1136_v55, %v1034_v35  ;;  %v1043_v55 = vadd.f32 %v1023_v57, %v3073_v30  ;;  %v1247_v31 = vld [vmem:[#allocation7 + $0x560] sm:$0xff] }
 0x296   :  { %v3076_v9 = vld [vmem:[#allocation21_spill] sm:$0xff] }
 0x297   :  { %v1068_v44 = vpop.permute.xlu1 %1067  ;;  %v1190_v10 = vpop.permute.xlu2 %1189 }
 0x298   :  { %v2818_v32 = vpop.permute.xlu0 %1065  ;;  %v1105_v24 = vsel %vm1091_vm8, %v2654_v41, %v1068_v44  ;;  %v1126_v41 = vld [vmem:[#allocation7 + $0x4c8] sm:$0xff]  ;;  %v1100_v62 = vsel %vm1091_vm8, %v1068_v44, %v2665_v33  ;;  %v1121_v44 = vld [vmem:[#allocation7 + $0x4a0] sm:$0xff]  ;;  %v1227_v17 = vsel %vm1213_vm9, %v2742_v18, %v1190_v10  ;;  %v1040_v18 = vadd.f32 %v1020_v7, %v3076_v9 }
 0x299   :  { %v1145_v23 = vmul.f32 %v1125_v20, %v1105_v24  ;;  %v1099_v2 = vsel %vm1091_vm8, %v2818_v32, %v2573_v45  ;;  %v1104_v15 = vsel %vm1091_vm8, %v2553_v29, %v2818_v32  ;;  %v1146_v34 = vmul.f32 %v1126_v41, %v1100_v62  ;;  %v3074_v20 = vld [vmem:[#allocation38_spill] sm:$0xff]  ;;  %v1235_v9 = vld [vmem:[#allocation7 + $0x500] sm:$0xff] }
 0x29a   :  { %v1044_v24 = vadd.f32 %v1024_v42, %v3074_v20  ;;  %v1248_v29 = vld [vmem:[#allocation7 + $0x568] sm:$0xff]  ;;  %v1222_v32 = vsel %vm1213_vm9, %v1190_v10, %v2775_v13  ;;  %v2902_v42 = vld [vmem:[#allocation8] sm:$0xff] }
 0x29b   :  { %v1165_v22 = vadd.f32 %v1145_v23, %v1043_v55  ;;  %v1268_v62 = vmul.f32 %v1248_v29, %v1222_v32  ;;  %v995_v55 = vld [vmem:[#allocation7 + $0x3e0] sm:$0xff]  ;;  %v1118_v29 = vld [vmem:[#allocation7 + $0x488] sm:$0xff] }
 0x29f   :  { %v2832_v5 = vpop.permute.xlu1 %1193 }
 0x2a0   :  { %v2846_v28 = vpop.permute.xlu0 %1175 }
 0x2a7   :  { %v1206_v51 = vpop.permute.xlu1 %1205 }
 0x2a8   :  { %v1215_v49 = vsel %vm1213_vm9, %v2801_v52, %v1206_v51  ;;  %v1230_v11 = vsel %vm1213_vm9, %v1206_v51, %v2846_v28  ;;  %v1204_v63 = vpop.permute.xlu0 %1203 }
 0x2a9   :  { %v1261_v27 = vmul.f32 %v1241_v38, %v1215_v49  ;;  %v1262_v36 = vmul.f32 %v1242_v1, %v1230_v11  ;;  %v1214_v0 = vsel %vm1213_vm9, %v2832_v5, %v1204_v63  ;;  %v1229_v33 = vsel %vm1213_vm9, %v1204_v63, %v2782_v50 }
 0x2aa   :  { %v1257_v61 = vmul.f32 %v1237_v6, %v1214_v0  ;;  %v1258_v54 = vmul.f32 %v1238_v48, %v1229_v33  ;;  %v1141_v38 = vmul.f32 %v1121_v44, %v1104_v15  ;;  %v1142_v1 = vmul.f32 %v1122_v43, %v1099_v2  ;;  %v3075_v6 = vld [vmem:[#allocation18_spill] sm:$0xff]  ;;  %v873_v44 = vld [vmem:[#allocation7 + $0x340] sm:$0xff]  ;;  %v3078_v2 = vld [vmem:[#allocation16_spill] sm:$0xff] }
 0x2ab   :  { %v1281_v60 = vadd.f32 %v1261_v27, %v1159_v8  ;;  %v1282_v16 = vadd.f32 %v1262_v36, %v1160_v59  ;;  %v1243_v8 = vld [vmem:[#allocation7 + $0x540] sm:$0xff]  ;;  %v1244_v59 = vld [vmem:[#allocation7 + $0x548] sm:$0xff]  ;;  %v1039_v48 = vadd.f32 %v1019_v4, %v3075_v6  ;;  %v859_v15 = vsel %vm847_vm6, %v3078_v2, %v2764_v47 }
 0x2ac   :  { %v1277_v35 = vadd.f32 %v1257_v61, %v1155_v46  ;;  %v1278_v45 = vadd.f32 %v1258_v54, %v1156_v56  ;;  %v1166_v46 = vadd.f32 %v1146_v34, %v1044_v24  ;;  %v1267_v56 = vmul.f32 %v1247_v31, %v1227_v17  ;;  %v874_v43 = vld [vmem:[#allocation7 + $0x348] sm:$0xff]  ;;  %v991_v61 = vld [vmem:[#allocation7 + $0x3c0] sm:$0xff] }
 0x2ad   :  { %v1161_v4 = vadd.f32 %v1141_v38, %v1039_v48  ;;  %v1162_v11 = vadd.f32 %v1142_v1, %v1040_v18  ;;  %v980_v54 = vsel %vm969_vm7, %v2621_v3, %v2810_v14  ;;  %v1113_v3 = vld [vmem:[#allocation7 + $0x460] sm:$0xff]  ;;  %v1114_v14 = vld [vmem:[#allocation7 + $0x468] sm:$0xff]  ;;  %v1184_v38 = vpop.permute.xlu2 %1183 }
 0x2ae   :  { %v1301_v57 = vpack.c.bf16 %v1281_v60, %v1277_v35  ;;  %v1302_v51 = vpack.c.bf16 %v1282_v16, %v1278_v45  ;;  %v1287_v27 = vadd.f32 %v1267_v56, %v1165_v22  ;;  %v1288_v33 = vadd.f32 %v1268_v62, %v1166_v46  ;;  %v996_v35 = vld [vmem:[#allocation7 + $0x3e8] sm:$0xff]  ;;  %v1117_v1 = vld [vmem:[#allocation7 + $0x480] sm:$0xff] }
 0x2af   :  { %v1188_v41 = vpop.permute.xlu1 %1187  ;;  %v893_v60 = vmul.f32 %v873_v44, %v859_v15  ;;  %v1011_v30 = vmul.f32 %v991_v61, %v980_v54  ;;  %v1236_v18 = vld [vmem:[#allocation7 + $0x508] sm:$0xff] }
 0x2b0   :  { %v1221_v49 = vsel %vm1213_vm9, %v1188_v41, %v2675_v12  ;;  %v1226_v13 = vsel %vm1213_vm9, %v2663_v26, %v1188_v41  ;;  %v942_v23 = vpop.permute.xlu0 %941  ;;  %1384 = vmatpush.bf16.msrb.mxu2 %v1301_v57  ;;  %1403 = vmatpush.bf16.msrb.mxu3 %v1302_v51  ;;  %v3077_v12 = vld [vmem:[#allocation35_spill] sm:$0xff]  ;;  %v3080_v51 = vld [vmem:[#allocation32_spill] sm:$0xff]  ;;  %v1239_v41 = vld [vmem:[#allocation7 + $0x520] sm:$0xff] }
 0x2b1   :  { %v1263_v63 = vmul.f32 %v1243_v8, %v1226_v13  ;;  %v1264_v10 = vmul.f32 %v1244_v59, %v1221_v49  ;;  %v854_v26 = vsel %vm847_vm6, %v2764_v47, %v3077_v12  ;;  %v976_v47 = vsel %vm969_vm7, %v942_v23, %v2649_v19  ;;  %v1240_v62 = vld [vmem:[#allocation7 + $0x528] sm:$0xff] }
 0x2b2   :  { %v894_v16 = vmul.f32 %v874_v43, %v854_v26  ;;  %v981_v45 = vsel %vm969_vm7, %v2705_v21, %v942_v23  ;;  %v1016_v22 = vmul.f32 %v996_v35, %v976_v47  ;;  %v1531_v49 = vld [vmem:[#allocation8 + $0x8] sm:$0xff] }
 0x2b3   :  { %v1283_v36 = vadd.f32 %v1263_v63, %v1161_v4  ;;  %v1284_v0 = vadd.f32 %v1264_v10, %v1162_v11  ;;  %1516 = vmatmul.msk.bf16.vlgmr.msrb.gmra.mxu2 %vm160_vm1, %v2902_v42  ;;  %1518 = vmatmul.msk.bf16.vlgmr.msrb.gmra.mxu3 %vm160_vm1, %v2902_v42  ;;  %v1015_v32 = vmul.f32 %v995_v55, %v981_v45 }
 0x2b4   :  { %v914_v6 = vadd.f32 %v894_v16, %v3080_v51 }
 0x2b5   :  { %v1303_v7 = vpack.c.bf16 %v1287_v27, %v1283_v36  ;;  %v1304_v34 = vpack.c.bf16 %v1288_v33, %v1284_v0 }
 0x2b6   :  { %v1036_v23 = vadd.f32 %v1016_v22, %v914_v6 }
 0x2b7   :  { %1345 = vmatpush.bf16.msrb.mxu0 %v1303_v7  ;;  %1364 = vmatpush.bf16.msrb.mxu1 %v1304_v34  ;;  %v1064_v31 = vpop.permute.xlu1 %1063 }
 0x2b8   :  { %v1062_v17 = vpop.permute.xlu0 %1061  ;;  %v1098_v19 = vsel %vm1091_vm8, %v1064_v31, %v2726_v58  ;;  %v1103_v21 = vsel %vm1091_vm8, %v2803_v53, %v1064_v31  ;;  %v1219_v58 = vsel %vm1213_vm9, %v1184_v38, %v2832_v5  ;;  %v1224_v53 = vsel %vm1213_vm9, %v2782_v50, %v1184_v38 }
 0x2b9   :  { %v1097_v20 = vsel %vm1091_vm8, %v1062_v17, %v2799_v39  ;;  %v1102_v24 = vsel %vm1091_vm8, %v2709_v37, %v1062_v17  ;;  %v3079_v39 = vld [vmem:[#allocation41_spill] sm:$0xff]  ;;  %v3081_v37 = vld [vmem:[#allocation22_spill] sm:$0xff]  ;;  %v1137_v46 = vmul.f32 %v1117_v1, %v1103_v21  ;;  %v1138_v56 = vmul.f32 %v1118_v29, %v1098_v19 }
 0x2ba   :  { %v1133_v8 = vmul.f32 %v1113_v3, %v1102_v24  ;;  %v1134_v59 = vmul.f32 %v1114_v14, %v1097_v20  ;;  %v913_v57 = vadd.f32 %v893_v60, %v3079_v39  ;;  %v1031_v48 = vadd.f32 %v1011_v30, %v3081_v37 }
 0x2bb   :  { %v1255_v10 = vmul.f32 %v1235_v9, %v1224_v53  ;;  %v1256_v27 = vmul.f32 %v1236_v18, %v1219_v58  ;;  %v1158_v0 = vadd.f32 %v1138_v56, %v1036_v23 }
 0x2bc   :  { %v1035_v13 = vadd.f32 %v1015_v32, %v913_v57  ;;  %v1153_v4 = vadd.f32 %v1133_v8, %v1031_v48  ;;  %v1154_v11 = vadd.f32 %v1134_v59, %v2816_v40 }
 0x2be   :  { %v1157_v36 = vadd.f32 %v1137_v46, %v1035_v13  ;;  %v1275_v40 = vadd.f32 %v1255_v10, %v1153_v4  ;;  %v1276_v44 = vadd.f32 %v1256_v27, %v1154_v11 }
 0x2c0   :  { %v1186_v63 = vpop.permute.xlu0 %1185 }
 0x2c1   :  { %v1220_v5 = vsel %vm1213_vm9, %v1186_v63, %v2801_v52  ;;  %v1225_v50 = vsel %vm1213_vm9, %v2846_v28, %v1186_v63 }
 0x2c2   :  { %v1259_v33 = vmul.f32 %v1239_v41, %v1225_v50  ;;  %v1260_v12 = vmul.f32 %v1240_v62, %v1220_v5 }
 0x2c3   :  { %1517 = vmatmul.msk.bf16.gmra.mxu2 %vm160_vm1, %v1531_v49  ;;  %1519 = vmatmul.msk.bf16.gmra.mxu3 %vm160_vm1, %v1531_v49 }
 0x2c4   :  { %v1279_v26 = vadd.f32 %v1259_v33, %v1157_v36  ;;  %v1280_v43 = vadd.f32 %v1260_v12, %v1158_v0 }
 0x2c6   :  { %v1299_v2 = vpack.c.bf16 %v1279_v26, %v1275_v40  ;;  %v1300_v15 = vpack.c.bf16 %v1280_v43, %v1276_v44 }
 0x2c8   :  { %1346 = vmatpush.bf16.msrb.mxu0 %v1299_v2  ;;  %1365 = vmatpush.bf16.msrb.mxu1 %v1300_v15 }
 0x2cb   :  { %1512 = vmatmul.msk.bf16.vlgmr.msrb.gmra.mxu0 %vm160_vm1, %v2902_v42  ;;  %1514 = vmatmul.msk.bf16.vlgmr.msrb.gmra.mxu1 %vm160_vm1, %v2902_v42 }
 0x2db   :  { %1513 = vmatmul.msk.bf16.gmra.mxu0 %vm160_vm1, %v1531_v49  ;;  %1515 = vmatmul.msk.bf16.gmra.mxu1 %vm160_vm1, %v1531_v49 }
 0x336   :  { %v1386_v25 = vpop.f32.mrf.mxu2  ;;  %v1405_v52 = vpop.f32.mrf.mxu3 }
 0x337   :  { %1417 = vst [vmem:[#allocation10 + $0x10] sm:$0xff] %v1386_v25 }
 0x338   :  { %1418 = vst [vmem:[#allocation10 + $0x18] sm:$0xff] %v1405_v52 }
 0x33e   :  { %v1388_v28 = vpop.f32.mrf.mxu2  ;;  %v1407_v61 = vpop.f32.mrf.mxu3 }
 0x33f   :  { %1421 = vst [vmem:[#allocation10 + $0x30] sm:$0xff] %v1388_v28 }
 0x340   :  { %1422 = vst [vmem:[#allocation10 + $0x38] sm:$0xff] %v1407_v61 }
 0x346   :  { %v1391_v54 = vpop.f32.mrf.mxu2  ;;  %v1410_v7 = vpop.f32.mrf.mxu3 }
 0x347   :  { %1425 = vst [vmem:[#allocation10 + $0x50] sm:$0xff] %v1391_v54 }
 0x348   :  { %v1348_v34 = vpop.f32.mrf.mxu0  ;;  %v1367_v60 = vpop.f32.mrf.mxu1  ;;  %1426 = vst [vmem:[#allocation10 + $0x58] sm:$0xff] %v1410_v7 }
 0x349   :  { %1415 = vst [vmem:[#allocation10] sm:$0xff] %v1348_v34 }
 0x34a   :  { %1416 = vst [vmem:[#allocation10 + $0x8] sm:$0xff] %v1367_v60 }
 0x34e   :  { %v1393_v42 = vpop.f32.mrf.mxu2  ;;  %v1412_v16 = vpop.f32.mrf.mxu3 }
 0x34f   :  { %1429 = vst [vmem:[#allocation10 + $0x70] sm:$0xff] %v1393_v42 }
 0x350   :  { %v1350_v30 = vpop.f32.mrf.mxu0  ;;  %v1369_v55 = vpop.f32.mrf.mxu1  ;;  %1430 = vst [vmem:[#allocation10 + $0x78] sm:$0xff] %v1412_v16 }
 0x351   :  { %1419 = vst [vmem:[#allocation10 + $0x20] sm:$0xff] %v1350_v30 }
 0x352   :  { %1420 = vst [vmem:[#allocation10 + $0x28] sm:$0xff] %v1369_v55 }
 0x358   :  { %v1353_v31 = vpop.f32.mrf.mxu0  ;;  %v1372_v17 = vpop.f32.mrf.mxu1 }
 0x359   :  { %1423 = vst [vmem:[#allocation10 + $0x40] sm:$0xff] %v1353_v31 }
 0x35a   :  { %1424 = vst [vmem:[#allocation10 + $0x48] sm:$0xff] %v1372_v17 }
 0x360   :  { %v1355_v35 = vpop.f32.mrf.mxu0  ;;  %v1374_v47 = vpop.f32.mrf.mxu1 }
 0x361   :  { %1427 = vst [vmem:[#allocation10 + $0x60] sm:$0xff] %v1355_v35 }
 0x362   :  { %1428 = vst [vmem:[#allocation10 + $0x68] sm:$0xff] %v1374_v47 }
 0x363   :  { %1443 = dma.vmem_to_hbm [thread:$0]  %s1436_s19, 2048, %s1438_s22, [#allocation4], %s1686_s9, %s1686_s9, %s1687_s10  }
 0x364   :  { %1677 = dma.done.wait [#allocation4], 2048  }
 0x365   :  { %1678 = vsyncadd [#allocation4], 4294965248 }
 0x366   :  { %1448 = vsyncpa [#allocation3], 1 }
 0x367   :  { %1449 = vsyncpa [#allocation6], 1 }
 0x368   :  { %1450 = vsyncpa [#allocation9], 1 }
 0x369   :  { %1451 = vsyncpa [#allocation4], 1 }

</bundles_post_ra>
